<compile_context>
chip_gen: v5e
topology: v5e:2x2
jax: 0.10.0
libtpu: 0.0.40
codegen_flags: <defaults>
</compile_context>

<pallas_src>
import functools

import jax
import jax.numpy as jnp
from jax.experimental import pallas as pl
from jax.experimental.pallas import tpu as pltpu


# ---------------------------------------------------------------------------
# Kernel
# ---------------------------------------------------------------------------
def _bsp2e_kernel(x_ref, w1_ref, b1_ref, w2_ref, b2_ref, out_ref, *, eps):
    # decoder1: Linear (bf16 operands -> f32 MXU accumulate)
    h = jnp.dot(x_ref[...], w1_ref[...],
                preferred_element_type=jnp.float32)          # (tb, hidden) f32
    h = h + b1_ref[...]                                       # broadcast (1, hidden)

    # SiLU (f32 epilogue on the VPU/EUP)
    h = h * jax.nn.sigmoid(h)

    # RMSNorm over the full decoder1 output dimension.
    # TODO(synk): RMSNorm is not defined in the reference snippet; standard
    # RMSNorm (rsqrt of mean-square, eps=1e-6, learnable weight) is assumed.
    # The learnable scale g is folded into w2_ref by the wrapper.
    ms = jnp.mean(h * h, axis=-1, keepdims=True)
    h = h * jax.lax.rsqrt(ms + eps)

    # decoder2 applied as a single lane-dense matmul against the block-diagonal,
    # g-folded weight (hidden, num_chunks*chunk_size). Output last dim is a
    # multiple of 128 -> unmasked stores.
    y = jnp.dot(h.astype(w2_ref.dtype), w2_ref[...],
                preferred_element_type=jnp.float32)           # (tb, nc*cs)
    y = y + b2_ref[...]
    out_ref[...] = y.astype(out_ref.dtype)


# ---------------------------------------------------------------------------
# Wrapper-side parameter preparation (done once per weight set; under jit this
# constant-folds).
# ---------------------------------------------------------------------------
def prepare_params(params, *, num_chunks, chunk_size,
                   compute_dtype=jnp.bfloat16):
    """Build bf16 w1, block-diagonal g-folded bf16 W2, and tiled bias."""
    w1, b1, g, w2, b2 = params
    din, hidden = w1.shape
    ph, cs = w2.shape
    assert cs == chunk_size and hidden == num_chunks * ph
    out_dim = num_chunks * chunk_size

    # W2_bd[c*ph + p, c*cs + k] = w2[p, k]   (same decoder2 for every chunk)
    eye = jnp.eye(num_chunks, dtype=jnp.float32)
    w2_bd = jnp.einsum("cd,pk->cpdk", eye, w2.astype(jnp.float32))
    w2_bd = w2_bd.reshape(hidden, out_dim)
    # Fold the RMSNorm scale g (per-hidden-row) into the weight.
    w2_bd = w2_bd * g.reshape(hidden, 1).astype(jnp.float32)

    # Tiled decoder2 bias: column c*cs + k -> b2[k]
    b2_bd = jnp.tile(b2.astype(jnp.float32), (1, num_chunks))   # (1, out_dim)

    return (w1.astype(compute_dtype),
            b1.astype(jnp.float32),
            w2_bd.astype(compute_dtype),
            b2_bd)


def _pick_batch_tile(batch, max_tile=256):
    """Largest multiple-of-8 divisor of `batch` <= max_tile; else full batch."""
    for tb in range(min(batch, max_tile) // 8 * 8, 0, -8):
        if batch % tb == 0:
            return tb
    return batch


# ---------------------------------------------------------------------------
# Forward
# ---------------------------------------------------------------------------
def bsp2e_forward(x, params, *, num_chunks, chunk_size, seq_len, latent_dim,
                  eps=1e-6, compute_dtype=jnp.bfloat16, max_batch_tile=256):
    B, din = x.shape
    hidden = params[0].shape[1]
    out_dim = num_chunks * chunk_size
    assert out_dim == seq_len * latent_dim

    w1_c, b1_c, w2bd_c, b2bd_c = prepare_params(
        params, num_chunks=num_chunks, chunk_size=chunk_size,
        compute_dtype=compute_dtype)
    x_c = x.astype(compute_dtype)

    tb = _pick_batch_tile(B, max_batch_tile)
    grid = (B // tb,)

    kernel = functools.partial(_bsp2e_kernel, eps=eps)

    out_flat = pl.pallas_call(
        kernel,
        out_shape=jax.ShapeDtypeStruct((B, out_dim), x.dtype),
        grid=grid,
        in_specs=[
            pl.BlockSpec((tb, din), lambda i: (i, 0)),        # x tile
            pl.BlockSpec((din, hidden), lambda i: (0, 0)),    # w1 (resident)
            pl.BlockSpec((1, hidden), lambda i: (0, 0)),      # b1
            pl.BlockSpec((hidden, out_dim), lambda i: (0, 0)),  # block-diag W2 (g folded)
            pl.BlockSpec((1, out_dim), lambda i: (0, 0)),     # tiled b2
        ],
        out_specs=pl.BlockSpec((tb, out_dim), lambda i: (i, 0)),
        compiler_params=pltpu.CompilerParams(
            dimension_semantics=("parallel",)),               # batch axis -> 2 TCs on v7x
    )(x_c, w1_c, b1_c, w2bd_c, b2bd_c)

    return out_flat.reshape(B, seq_len, latent_dim)


# ---------------------------------------------------------------------------
# References & init
# ---------------------------------------------------------------------------
def _init_linear(key, fan_in, fan_out, dtype=jnp.float32):
    """PyTorch nn.Linear default init: U(-1/sqrt(fan_in), 1/sqrt(fan_in))."""
    kw, kb = jax.random.split(key)
    bound = 1.0 / (fan_in ** 0.5)
    w = jax.random.uniform(kw, (fan_in, fan_out), dtype, -bound, bound)
    b = jax.random.uniform(kb, (1, fan_out), dtype, -bound, bound)
    return w, b


def _reference_f32(x, params, *, num_chunks, chunk_size, seq_len, latent_dim,
                   eps=1e-6):
    """Pure-f32 JAX reference mirroring the PyTorch forward."""
    w1, b1, g, w2, b2 = params
    h = x @ w1 + b1[0]
    h = h * jax.nn.sigmoid(h)
    h = h * jax.lax.rsqrt(jnp.mean(h * h, axis=-1, keepdims=True) + eps) * g[0]
    h = h.reshape(x.shape[0], num_chunks, -1)
    y = h @ w2 + b2[0]
    return y.reshape(x.shape[0], seq_len, latent_dim)


def _reference_matched(x_c, w1_c, b1, w2bd_c, b2bd, *, eps=1e-6):
    """Reference with the exact numerics of the kernel (bf16 matmul operands,
    f32 accumulate, g folded into the block-diagonal W2)."""
    h = jnp.dot(x_c, w1_c, preferred_element_type=jnp.float32) + b1
    h = h * jax.nn.sigmoid(h)
    h = h * jax.lax.rsqrt(jnp.mean(h * h, axis=-1, keepdims=True) + eps)
    y = jnp.dot(h.astype(x_c.dtype), w2bd_c,
                preferred_element_type=jnp.float32) + b2bd
    return y


# ---------------------------------------------------------------------------
# Self-test
# ---------------------------------------------------------------------------
if __name__ == "__main__":
    # Small, self-consistent hyperparameters (mirroring BSP2E.__init__):
    latent_dim = 32                      # bse_latent_dim
    bsp_latent_dim = 32                  # decoder1 input dim
    bsp2e_transformer_seq_length = 8
    chunk_size = 16
    num_chunks = (bsp2e_transformer_seq_length * bsp_latent_dim) // chunk_size  # 16
    pre_vae_hidden_dim = 2 * bsp_latent_dim                                     # 64
    hidden = num_chunks * pre_vae_hidden_dim                                    # 1024
    batch = 2

    key = jax.random.PRNGKey(0)
    kx, k1, k2 = jax.random.split(key, 3)

    x = jax.random.normal(kx, (batch, bsp_latent_dim), jnp.float32)

    w1, b1 = _init_linear(k1, bsp_latent_dim, hidden)            # decoder1 Linear
    g = jnp.ones((1, hidden), jnp.float32)                       # RMSNorm weight
    w2, b2 = _init_linear(k2, pre_vae_hidden_dim, chunk_size)    # decoder2 Linear
    params = (w1, b1, g, w2, b2)

    cfg = dict(num_chunks=num_chunks,
               chunk_size=chunk_size,
               seq_len=bsp2e_transformer_seq_length,
               latent_dim=latent_dim)

    out = bsp2e_forward(x, params, **cfg)
    out = jax.block_until_ready(out)
    assert out.shape == (batch, bsp2e_transformer_seq_length, latent_dim), out.shape

    # 1) Tight check against a reference with identical numerics (bf16 MXU
    #    operands, f32 accumulate, g folded into the block-diagonal W2).
    prep = prepare_params(params, num_chunks=num_chunks, chunk_size=chunk_size)
    ref_m = _reference_matched(x.astype(jnp.bfloat16), *prep, eps=1e-6)
    ref_m = ref_m.reshape(out.shape)
    assert jnp.allclose(out, ref_m, atol=1e-4, rtol=1e-4), \
        float(jnp.max(jnp.abs(out - ref_m)))

    # 2) Loose check against the full-f32 PyTorch-mirror reference (the bf16
    #    matmul operands introduce ~1e-2-level deviations by design).
    ref = _reference_f32(x, params, **cfg)
    assert jnp.allclose(out, ref, atol=5e-2), \
        float(jnp.max(jnp.abs(out - ref)))

    print("KERNEL_OK")
</pallas_src>

<mosaic_0001>
module attributes {stable_mosaic.version = 11 : i64} {
  func.func @_bsp2e_kernel(%arg0: i32, %arg1: memref<2x32xbf16, #tpu.memory_space<vmem>>, %arg2: memref<32x1024xbf16, #tpu.memory_space<vmem>>, %arg3: memref<1x1024xf32, #tpu.memory_space<vmem>>, %arg4: memref<1024x256xbf16, #tpu.memory_space<vmem>>, %arg5: memref<1x256xf32, #tpu.memory_space<vmem>>, %arg6: memref<2x256xf32, #tpu.memory_space<vmem>>) attributes {dimension_semantics = [#tpu.dimension_semantics<parallel>], iteration_bounds = array<i64: 1>, scalar_prefetch = 0 : i64, scratch_operands = 0 : i64, tpu.core_type = #tpu.core_type<tc>, window_params = [{transform_indices = @transform_0, window_bounds = array<i64: 2, 32>}, {pipeline_mode = #tpu.pipeline_mode<synchronous>, transform_indices = @transform_1, window_bounds = array<i64: 32, 1024>}, {pipeline_mode = #tpu.pipeline_mode<synchronous>, transform_indices = @transform_2, window_bounds = array<i64: 1, 1024>}, {pipeline_mode = #tpu.pipeline_mode<synchronous>, transform_indices = @transform_3, window_bounds = array<i64: 1024, 256>}, {pipeline_mode = #tpu.pipeline_mode<synchronous>, transform_indices = @transform_4, window_bounds = array<i64: 1, 256>}, {transform_indices = @transform_5, window_bounds = array<i64: 2, 256>}]} {
    %c0 = arith.constant 0 : index
    %c0_0 = arith.constant 0 : index
    %0 = vector.load %arg1[%c0, %c0_0] : memref<2x32xbf16, #tpu.memory_space<vmem>>, vector<2x32xbf16>
    %c0_1 = arith.constant 0 : index
    %c0_2 = arith.constant 0 : index
    %1 = vector.load %arg2[%c0_1, %c0_2] : memref<32x1024xbf16, #tpu.memory_space<vmem>>, vector<32x1024xbf16>
    %cst = arith.constant dense<0.000000e+00> : vector<2x1024xf32>
    %2 = tpu.matmul %0, %1, %cst {dimension_numbers = #tpu.dot_dimension_numbers<[1], [0], [0], [1], [0, 0, 1, 1], [], []>} : vector<2x32xbf16>, vector<32x1024xbf16>, vector<2x1024xf32> -> vector<2x1024xf32>
    %c0_3 = arith.constant 0 : index
    %c0_4 = arith.constant 0 : index
    %3 = vector.load %arg3[%c0_3, %c0_4] : memref<1x1024xf32, #tpu.memory_space<vmem>>, vector<1x1024xf32>
    %4 = vector.broadcast %3 : vector<1x1024xf32> to vector<2x1024xf32>
    %5 = arith.addf %2, %4 : vector<2x1024xf32>
    %6 = arith.negf %5 : vector<2x1024xf32>
    %7 = math.exp %6 : vector<2x1024xf32>
    %cst_5 = arith.constant 1.000000e+00 : f32
    %8 = vector.broadcast %cst_5 : f32 to vector<2x1024xf32>
    %9 = arith.addf %8, %7 : vector<2x1024xf32>
    %10 = arith.divf %8, %9 : vector<2x1024xf32>
    %11 = arith.mulf %5, %10 : vector<2x1024xf32>
    %12 = arith.mulf %11, %11 : vector<2x1024xf32>
    %cst_6 = arith.constant dense<0.000000e+00> : vector<2xf32>
    %13 = vector.multi_reduction <add>, %12, %cst_6 [1] : vector<2x1024xf32> to vector<2xf32>
    %14 = vector.shape_cast %13 : vector<2xf32> to vector<2x1xf32>
    %cst_7 = arith.constant 1.024000e+03 : f32
    %15 = vector.broadcast %cst_7 : f32 to vector<2x1xf32>
    %16 = arith.divf %14, %15 : vector<2x1xf32>
    %cst_8 = arith.constant 9.99999997E-7 : f32
    %17 = vector.broadcast %cst_8 : f32 to vector<2x1xf32>
    %18 = arith.addf %16, %17 : vector<2x1xf32>
    %19 = math.rsqrt %18 : vector<2x1xf32>
    %20 = vector.broadcast %19 : vector<2x1xf32> to vector<2x1024xf32>
    %21 = arith.mulf %11, %20 : vector<2x1024xf32>
    %22 = arith.truncf %21 : vector<2x1024xf32> to vector<2x1024xbf16>
    %c0_9 = arith.constant 0 : index
    %c0_10 = arith.constant 0 : index
    %23 = vector.load %arg4[%c0_9, %c0_10] : memref<1024x256xbf16, #tpu.memory_space<vmem>>, vector<1024x256xbf16>
    %cst_11 = arith.constant dense<0.000000e+00> : vector<2x256xf32>
    %24 = tpu.matmul %22, %23, %cst_11 {dimension_numbers = #tpu.dot_dimension_numbers<[1], [0], [0], [1], [0, 0, 1, 1], [], []>} : vector<2x1024xbf16>, vector<1024x256xbf16>, vector<2x256xf32> -> vector<2x256xf32>
    %c0_12 = arith.constant 0 : index
    %c0_13 = arith.constant 0 : index
    %25 = vector.load %arg5[%c0_12, %c0_13] : memref<1x256xf32, #tpu.memory_space<vmem>>, vector<1x256xf32>
    %26 = vector.broadcast %25 : vector<1x256xf32> to vector<2x256xf32>
    %27 = arith.addf %24, %26 : vector<2x256xf32>
    %c0_14 = arith.constant 0 : index
    %c0_15 = arith.constant 0 : index
    %28 = vector.load %arg6[%c0_14, %c0_15] : memref<2x256xf32, #tpu.memory_space<vmem>>, vector<2x256xf32>
    tpu.vector_store %arg6[%c0_14, %c0_15], %27 {strides = array<i32>} : memref<2x256xf32, #tpu.memory_space<vmem>>, vector<2x256xf32>,
    return
  }
  func.func @transform_0(%arg0: i32) -> (i32, i32) {
    %c0_i32 = arith.constant 0 : i32
    %c0_i32_0 = arith.constant 0 : i32
    return %arg0, %c0_i32 : i32, i32
  }
  func.func @transform_1(%arg0: i32) -> (i32, i32) {
    %c0_i32 = arith.constant 0 : i32
    %c0_i32_0 = arith.constant 0 : i32
    %c0_i32_1 = arith.constant 0 : i32
    return %c0_i32, %c0_i32_0 : i32, i32
  }
  func.func @transform_2(%arg0: i32) -> (i32, i32) {
    %c0_i32 = arith.constant 0 : i32
    %c0_i32_0 = arith.constant 0 : i32
    %c0_i32_1 = arith.constant 0 : i32
    return %c0_i32, %c0_i32_0 : i32, i32
  }
  func.func @transform_3(%arg0: i32) -> (i32, i32) {
    %c0_i32 = arith.constant 0 : i32
    %c0_i32_0 = arith.constant 0 : i32
    %c0_i32_1 = arith.constant 0 : i32
    return %c0_i32, %c0_i32_0 : i32, i32
  }
  func.func @transform_4(%arg0: i32) -> (i32, i32) {
    %c0_i32 = arith.constant 0 : i32
    %c0_i32_0 = arith.constant 0 : i32
    %c0_i32_1 = arith.constant 0 : i32
    return %c0_i32, %c0_i32_0 : i32, i32
  }
  func.func @transform_5(%arg0: i32) -> (i32, i32) {
    %c0_i32 = arith.constant 0 : i32
    %c0_i32_0 = arith.constant 0 : i32
    return %arg0, %c0_i32 : i32, i32
  }
}

</mosaic_0001>

<bundles_post_ra>
// kernel: tpu_custom_call.1
= control target key start
LH: loop header
LB: loop body
LE: loop exit
PB: predicated region body
PF: predicated region fallthrough
CT: control target
= control target key end

     0   :  { %10 = vsyncpa [#allocation3], 0  ;;  %s2797_s0 = inlined_call_operand.hbm [shape: bf16[2,32], index: 0, kind: input, shape index: {}]   ;;  %s2798_s1 = inlined_call_operand.hbm [shape: bf16[32,1024], index: 1, kind: input, shape index: {}]   ;;  %s2799_s2 = inlined_call_operand.hbm [shape: f32[1,1024], index: 2, kind: input, shape index: {}]   ;;  %s2800_s3 = inlined_call_operand.hbm [shape: bf16[1024,256], index: 3, kind: input, shape index: {}]   ;;  %s2801_s4 = inlined_call_operand.vmem [shape: f32[1,256], index: 4, kind: input, shape index: {}]   ;;  %s2802_s5 = inlined_call_operand.hbm [shape: f32[2,256], index: 5, kind: output, shape index: {}]  }
   0x1   :  { %11 = vsyncpa [#allocation6], 0 }
   0x2   :  { %12 = vsyncpa [#allocation9], 0  ;;  %s29_s20 = sshll.u32 %s2798_s1, 4  ;;  %s30_s20 = int_to_ptr.hbm [resolvable:$true] %s29_s20 }
   0x3   :  { %13 = vsyncpa [#allocation4], 0  ;;  %s2442_s21 = smov [#allocation5]   ;;  %s19_s25 = sshll.u32 %s2797_s0, 4  ;;  %s20_s25 = int_to_ptr.hbm [resolvable:$true] %s19_s25 }
   0x4   :  { %s31_s22 = sshll.u32 %s2442_s21, 4  ;;  %s2443_s26 = smov 512   ;;  %s32_s22 = int_to_ptr.vmem [resolvable:$true] %s31_s22 }
   0x5   :  { %s2444_s27 = smov 32   ;;  %s2445_s28 = smov [#allocation2]  }
   0x6   :  { %37 = dma.hbm_to_vmem [thread:$0]  %s30_s20, 2048, %s32_s22, [#allocation6], %s2443_s26, %s2443_s26, %s2444_s27  }
   0x7   :  { %s21_s29 = sshll.u32 %s2445_s28, 4  ;;  %s43_s7 = sshll.u32 %s2799_s2, 4  ;;  %s22_s29 = int_to_ptr.vmem [resolvable:$true] %s21_s29  ;;  %s44_s7 = int_to_ptr.hbm [resolvable:$true] %s43_s7 }
   0x8   :  { %24 = dma.hbm_to_vmem [thread:$0]  %s20_s25, 16, %s22_s29, [#allocation3]  }
   0x9   :  { %s53_s9 = sshll.u32 %s2800_s3, 4  ;;  %s2446_s10 = smov [#allocation7]   ;;  %s54_s9 = int_to_ptr.hbm [resolvable:$true] %s53_s9 }
   0xa   :  { %s45_s11 = sshll.u32 %s2446_s10, 4  ;;  %s2447_s0 = smov [#allocation8]   ;;  %s46_s11 = int_to_ptr.vmem [resolvable:$true] %s45_s11 }
   0xb   :  { %48 = dma.hbm_to_vmem [thread:$0]  %s44_s7, 128, %s46_s11, [#allocation6]  }
   0xc   :  { %s55_s12 = sshll.u32 %s2447_s0, 4  ;;  %s2448_s13 = smov 128   ;;  %s56_s12 = int_to_ptr.vmem [resolvable:$true] %s55_s12 }
   0xd   :  { %s2449_s14 = smov 8  }
   0xe   :  { %61 = dma.hbm_to_vmem [thread:$0]  %s54_s9, 16384, %s56_s12, [#allocation9], %s2448_s13, %s2448_s13, %s2449_s14  }
   0xf   :  { %2434 = dma.done.wait [#allocation3], 16  }
  0x10   :  { %2435 = vsyncadd [#allocation3], 4294967280 }
  0x11   :  { %2436 = dma.done.wait [#allocation6], 2176  }
  0x12   :  { %2437 = vsyncadd [#allocation6], 4294965120 }
  0x13   :  { %2438 = dma.done.wait [#allocation9], 16384  }
  0x14   :  { %2439 = vsyncadd [#allocation9], 4294950912  ;;  %vm196_vm0 = vcmask 261120   ;;  %v1566_v0 = vld [vmem:[#allocation5 + $0x40] sm:$0xf]  ;;  %vm472_vm7 = vcmask 1041408  }
  0x15   :  { %v2136_v1 = vld [vmem:[#allocation5 + $0x5c] sm:$0xf0]  ;;  %v2132_v2 = vld [vmem:[#allocation5 + $0x44] sm:$0xf]  ;;  %v1574_v5 = vld [vmem:[#allocation5 + $0x48] sm:$0xf] }
  0x16   :  { %v1567_v3 = vor.u32 %v2136_v1, %v1566_v0  ;;  %v1568_v4 = vld [vmem:[#allocation5 + $0x60] sm:$0xf0]  ;;  %v2137_v6 = vld [vmem:[#allocation5 + $0x64] sm:$0xf0]  ;;  %v2133_v9 = vld [vmem:[#allocation5 + $0x4c] sm:$0xf] }
  0x17   :  { %v1571_v7 = vor.u32 %v2132_v2, %v1568_v4  ;;  %v1575_v8 = vor.u32 %v2137_v6, %v1574_v5  ;;  %v1576_v10 = vld [vmem:[#allocation5 + $0x68] sm:$0xf0]  ;;  %v1534_v11 = vld [vmem:[#allocation5] sm:$0xf]  ;;  %v2124_v14 = vld [vmem:[#allocation5 + $0x4] sm:$0xf] }
  0x18   :  { %206 = vmatpush.bf16.msra.mxu0 %v1567_v3  ;;  %v1579_v12 = vor.u32 %v2133_v9, %v1576_v10  ;;  %v2128_v13 = vld [vmem:[#allocation5 + $0x1c] sm:$0xf0]  ;;  %v1536_v15 = vld [vmem:[#allocation5 + $0x20] sm:$0xf0]  ;;  %v1542_v18 = vld [vmem:[#allocation5 + $0x8] sm:$0xf] }
  0x19   :  { %219 = vmatpush.bf16.msra.mxu1 %v1571_v7  ;;  %232 = vmatpush.bf16.msra.mxu2 %v1575_v8  ;;  %v1535_v16 = vor.u32 %v2128_v13, %v1534_v11  ;;  %v1539_v17 = vor.u32 %v2124_v14, %v1536_v15  ;;  %v2129_v19 = vld [vmem:[#allocation5 + $0x24] sm:$0xf0]  ;;  %v2125_v20 = vld [vmem:[#allocation5 + $0xc] sm:$0xf]  ;;  %v81_v23 = vld [vmem:[#allocation2] sm:$0x1] }
  0x1a   :  { %245 = vmatpush.bf16.msra.mxu3 %v1579_v12  ;;  %v1543_v21 = vor.u32 %v2129_v19, %v1542_v18  ;;  %v1544_v22 = vld [vmem:[#allocation5 + $0x28] sm:$0xf0]  ;;  %v1582_v24 = vld [vmem:[#allocation5 + $0x50] sm:$0xf]  ;;  %v2134_v27 = vld [vmem:[#allocation5 + $0x54] sm:$0xf] }
  0x1b   :  { %v1547_v25 = vor.u32 %v2125_v20, %v1544_v22  ;;  %v2138_v26 = vld [vmem:[#allocation5 + $0x6c] sm:$0xf0]  ;;  %v1584_v28 = vld [vmem:[#allocation5 + $0x70] sm:$0xf0]  ;;  %v1590_v31 = vld [vmem:[#allocation5 + $0x58] sm:$0xf] }
  0x1c   :  { %207 = vmatpush.bf16.msra.mxu0 %v1535_v16  ;;  %v1583_v29 = vor.u32 %v2138_v26, %v1582_v24  ;;  %v1587_v30 = vor.u32 %v2134_v27, %v1584_v28  ;;  %v2139_v32 = vld [vmem:[#allocation5 + $0x74] sm:$0xf0]  ;;  %v2135_v33 = vld [vmem:[#allocation5 + $0x5c] sm:$0xf]  ;;  %v1550_v36 = vld [vmem:[#allocation5 + $0x10] sm:$0xf] }
  0x1d   :  { %220 = vmatpush.bf16.msra.mxu1 %v1539_v17  ;;  %233 = vmatpush.bf16.msra.mxu2 %v1543_v21  ;;  %v1591_v34 = vor.u32 %v2139_v32, %v1590_v31  ;;  %v1592_v35 = vld [vmem:[#allocation5 + $0x78] sm:$0xf0]  ;;  %v2130_v37 = vld [vmem:[#allocation5 + $0x2c] sm:$0xf0]  ;;  %v2126_v40 = vld [vmem:[#allocation5 + $0x14] sm:$0xf] }
  0x1e   :  { %246 = vmatpush.bf16.msra.mxu3 %v1547_v25  ;;  %v1595_v38 = vor.u32 %v2135_v33, %v1592_v35  ;;  %v1551_v39 = vor.u32 %v2130_v37, %v1550_v36  ;;  %v1552_v41 = vld [vmem:[#allocation5 + $0x30] sm:$0xf0]  ;;  %v1558_v42 = vld [vmem:[#allocation5 + $0x18] sm:$0xf]  ;;  %v2127_v45 = vld [vmem:[#allocation5 + $0x1c] sm:$0xf] }
  0x1f   :  { %1596 = vmatmul.msk.bf16.vlgmr.msra.gmra.mxu0 %vm196_vm0, %v81_v23  ;;  %v1555_v43 = vor.u32 %v2126_v40, %v1552_v41  ;;  %v2131_v44 = vld [vmem:[#allocation5 + $0x34] sm:$0xf0]  ;;  %v1560_v46 = vld [vmem:[#allocation5 + $0x38] sm:$0xf0]  ;;  %v2502_v49 = vld [vmem:[#allocation7] sm:$0xff]  ;;  %s1520_s18 = sshll.u32 %s2802_s5, 4  ;;  %s1521_s18 = int_to_ptr.hbm [resolvable:$true] %s1520_s18 }
  0x20   :  { %258 = vmatpush.bf16.msrb.mxu0 %v1583_v29  ;;  %1597 = vmatmul.msk.bf16.vlgmr.msra.gmra.mxu1 %vm196_vm0, %v81_v23  ;;  %v1559_v47 = vor.u32 %v2131_v44, %v1558_v42  ;;  %v1563_v48 = vor.u32 %v2127_v45, %v1560_v46  ;;  %v100_v50 = vperm.slane %v2502_v49, 0  ;;  %v101_v51 = vperm.slane %v2502_v49, 1 }
  0x21   :  { %271 = vmatpush.bf16.msrb.mxu1 %v1587_v30  ;;  %1598 = vmatmul.msk.bf16.vlgmr.msra.gmra.mxu2 %vm196_vm0, %v81_v23  ;;  %v102_v58 = vperm.slane %v2502_v49, 2  ;;  %v103_v59 = vperm.slane %v2502_v49, 3  ;;  %v104_v8 = vperm.slane %v2502_v49, 4  ;;  %v105_v9 = vperm.slane %v2502_v49, 5 }
  0x22   :  { %1599 = vmatmul.msk.bf16.vlgmr.msra.gmra.mxu3 %vm196_vm0, %v81_v23  ;;  %284 = vmatpush.bf16.msrb.mxu2 %v1591_v34  ;;  %v106_v27 = vperm.slane %v2502_v49, 6  ;;  %v107_v30 = vperm.slane %v2502_v49, 7 }
  0x23   :  { %297 = vmatpush.bf16.msrb.mxu3 %v1595_v38 }
  0x24   :  { %259 = vmatpush.bf16.msrb.mxu0 %v1551_v39 }
  0x25   :  { %272 = vmatpush.bf16.msrb.mxu1 %v1555_v43 }
  0x26   :  { %285 = vmatpush.bf16.msrb.mxu2 %v1559_v47 }
  0x27   :  { %298 = vmatpush.bf16.msrb.mxu3 %v1563_v48 }
  0x2f   :  { %1600 = vmatmul.msk.bf16.vlgmr.msrb.gmra.mxu0 %vm196_vm0, %v81_v23 }
  0x30   :  { %1601 = vmatmul.msk.bf16.vlgmr.msrb.gmra.mxu1 %vm196_vm0, %v81_v23 }
  0x31   :  { %1602 = vmatmul.msk.bf16.vlgmr.msrb.gmra.mxu2 %vm196_vm0, %v81_v23 }
  0x32   :  { %1603 = vmatmul.msk.bf16.vlgmr.msrb.gmra.mxu3 %vm196_vm0, %v81_v23 }
  0x9c   :  { %v209_v52 = vpop.f32.mrf.mxu0 }
  0x9d   :  { %v2506_v53 = vadd.f32 %v209_v52, %v100_v50  ;;  %v222_v54 = vpop.f32.mrf.mxu1 }
  0x9e   :  { %v2508_v55 = vadd.f32 %v222_v54, %v101_v51 }
  0x9f   :  { %v1604_v56 = vmul.f32 -1.442695, %v2506_v53 }
  0xa0   :  { %v1605_v57 = vmul.f32 -1.442695, %v2508_v55 }
  0xa1   :  { %2278 = vpow2.f32 %v1604_v56 }
  0xa2   :  { %2280 = vpow2.f32 %v1605_v57 }
  0xa4   :  { %v235_v60 = vpop.f32.mrf.mxu2  ;;  %v211_v63 = vpop.f32.mrf.mxu0 }
  0xa5   :  { %v2514_v61 = vadd.f32 %v235_v60, %v102_v58  ;;  %v248_v62 = vpop.f32.mrf.mxu3  ;;  %v224_v1 = vpop.f32.mrf.mxu1 }
  0xa6   :  { %v2516_v0 = vadd.f32 %v248_v62, %v103_v59 }
  0xa7   :  { %v1606_v2 = vmul.f32 -1.442695, %v2514_v61  ;;  %v2279_v3 = vpop.eup %2278 }
  0xa8   :  { %v1607_v4 = vmul.f32 -1.442695, %v2516_v0  ;;  %v2281_v5 = vpop.eup %2280  ;;  %v328_v6 = vadd.f32 1.0, %v2279_v3 }
  0xa9   :  { %2282 = vpow2.f32 %v1606_v2  ;;  %v2520_v7 = vadd.f32 1.0, %v2281_v5 }
  0xaa   :  { %2284 = vpow2.f32 %v1607_v4  ;;  %v345_v20 = vand.u32 2147483647, %v328_v6  ;;  %v347_v21 = vand.u32 2147483648, %v328_v6  ;;  %vm341_vm1 = vweird.f32 %v328_v6 }
  0xab   :  { %2286 = vrcp.f32 %v328_v6  ;;  %v360_v22 = vand.u32 2147483647, %v2520_v7  ;;  %vm356_vm2 = vweird.f32 %v2520_v7  ;;  %v362_v32 = vand.u32 2147483648, %v2520_v7 }
  0xac   :  { %2288 = vrcp.f32 %v2520_v7  ;;  %v237_v10 = vpop.f32.mrf.mxu2  ;;  %v261_v12 = vpop.f32.mrf.mxu0  ;;  %vm2543_vm3 = vcmp.eq.f32.partialorder %v345_v20, 8.507059e+37  ;;  %v348_v35 = vor.u32 1.1754944e-38, %v347_v21 }
  0xad   :  { %v250_v11 = vpop.f32.mrf.mxu3  ;;  %v2525_v13 = vadd.f32 %v261_v12, %v104_v8  ;;  %v274_v14 = vpop.f32.mrf.mxu1  ;;  %vm2547_vm4 = vcmp.eq.f32.partialorder %v360_v22, 8.507059e+37  ;;  %v363_v47 = vor.u32 1.1754944e-38, %v362_v32 }
  0xae   :  { %v2527_v16 = vadd.f32 %v274_v14, %v105_v9 }
  0xaf   :  { %v2283_v15 = vpop.eup %2282  ;;  %v1608_v26 = vmul.f32 -1.442695, %v2525_v13 }
  0xb0   :  { %v2285_v17 = vpop.eup %2284  ;;  %v2529_v18 = vadd.f32 1.0, %v2283_v15  ;;  %v1609_v29 = vmul.f32 -1.442695, %v2527_v16 }
  0xb1   :  { %v2287_v19 = vpop.eup %2286  ;;  %v2532_v23 = vadd.f32 1.0, %v2285_v17 }
  0xb2   :  { %v2289_v24 = vpop.eup %2288  ;;  %v337_v25 = vmul.f32 %v2287_v19, %v328_v6  ;;  %2290 = vrcp.f32 %v2529_v18  ;;  %vm342_vm5 = vweird.f32 %v2287_v19  ;;  %v375_v48 = vand.u32 2147483647, %v2529_v18 }
  0xb3   :  { %v352_v28 = vmul.f32 %v2289_v24, %v2520_v7  ;;  %2292 = vrcp.f32 %v2532_v23  ;;  %vm357_vm6 = vweird.f32 %v2289_v24  ;;  %vm343_vm8 = vmor %vm341_vm1, %vm342_vm5  ;;  %v377_v52 = vand.u32 2147483648, %v2529_v18 }
  0xb4   :  { %v338_v31 = vsub.f32 1.0, %v337_v25  ;;  %v287_v33 = vpop.f32.mrf.mxu2  ;;  %v263_v39 = vpop.f32.mrf.mxu0  ;;  %2294 = vpow2.f32 %v1608_v26  ;;  %vm358_vm9 = vmor %vm356_vm2, %vm357_vm6  ;;  %v390_v58 = vand.u32 2147483647, %v2532_v23  ;;  %v392_v59 = vand.u32 2147483648, %v2532_v23 }
  0xb5   :  { %v353_v36 = vsub.f32 1.0, %v352_v28  ;;  %v300_v38 = vpop.f32.mrf.mxu3  ;;  %v2551_v41 = vadd.f32 %v287_v33, %v106_v27  ;;  %v276_v42 = vpop.f32.mrf.mxu1  ;;  %2296 = vpow2.f32 %v1609_v29  ;;  %vm371_vm11 = vweird.f32 %v2529_v18  ;;  %v1670_v27 = vld [vmem:[#allocation8 + $0x70] sm:$0xf]  ;;  %v2155_v28 = vld [vmem:[#allocation8 + $0x74] sm:$0xf0] }
  0xb6   :  { %v339_v40 = vmul.f32 %v2287_v19, %v338_v31  ;;  %v2553_v44 = vadd.f32 %v300_v38, %v107_v30  ;;  %vm386_vm12 = vweird.f32 %v2532_v23  ;;  %vm376_vm15 = vcmp.eq.f32.partialorder %v375_v48, 8.507059e+37 }
  0xb7   :  { %v354_v43 = vmul.f32 %v2289_v24, %v353_v36  ;;  %v1610_v49 = vmul.f32 -1.442695, %v2551_v41  ;;  %vm2589_vm0 = vcmp.eq.f32.partialorder %v390_v58, 8.507059e+37  ;;  %v393_v22 = vor.u32 1.1754944e-38, %v392_v59  ;;  %v1862_v58 = vld [vmem:[#allocation8 + $0x1f0] sm:$0xf] }
  0xb8   :  { %v2291_v45 = vpop.eup %2290  ;;  %v340_v46 = vadd.f32 %v2287_v19, %v339_v40  ;;  %v1611_v54 = vmul.f32 -1.442695, %v2553_v44  ;;  %v1671_v39 = vor.u32 %v2155_v28, %v1670_v27  ;;  %v2201_v28 = vld [vmem:[#allocation8 + $0x1e4] sm:$0xf0] }
  0xb9   :  { %v355_v50 = vadd.f32 %v2289_v24, %v354_v43  ;;  %v367_v51 = vmul.f32 %v2291_v45, %v2529_v18  ;;  %v2293_v56 = vpop.eup %2292  ;;  %2298 = vpow2.f32 %v1610_v49  ;;  %vm372_vm10 = vweird.f32 %v2291_v45 }
  0xba   :  { %v344_v57 = vsel %vm343_vm8, %v2287_v19, %v340_v46  ;;  %v382_v1 = vmul.f32 %v2293_v56, %v2532_v23  ;;  %v2295_v2 = vpop.eup %2294  ;;  %2300 = vpow2.f32 %v1611_v54  ;;  %vm387_vm13 = vweird.f32 %v2293_v56  ;;  %vm373_vm14 = vmor %vm371_vm11, %vm372_vm10  ;;  %1299 = vmatpush.bf16.msra.mxu0 %v1671_v39  ;;  %v1790_v19 = vld [vmem:[#allocation8 + $0x160] sm:$0xf] }
  0xbb   :  { %v349_v60 = vsel %vm2543_vm3, %v348_v35, %v344_v57  ;;  %v359_v62 = vsel %vm358_vm9, %v2289_v24, %v355_v50  ;;  %v368_v63 = vsub.f32 1.0, %v367_v51  ;;  %v2297_v6 = vpop.eup %2296  ;;  %v2577_v10 = vadd.f32 1.0, %v2295_v2  ;;  %vm388_vm1 = vmor %vm386_vm12, %vm387_vm13  ;;  %v2171_v50 = vld [vmem:[#allocation8 + $0xf4] sm:$0xf0]  ;;  %v1798_v51 = vld [vmem:[#allocation8 + $0x170] sm:$0xf] }
  0xbc   :  { %v2570_v3 = vmul.f32 %v349_v60, %v2506_v53  ;;  %v364_v4 = vsel %vm2547_vm4, %v363_v47, %v359_v62  ;;  %v289_v5 = vpop.f32.mrf.mxu2  ;;  %v383_v9 = vsub.f32 1.0, %v382_v1  ;;  %v2581_v53 = vadd.f32 1.0, %v2297_v6  ;;  %v2187_v57 = vld [vmem:[#allocation8 + $0x174] sm:$0xf0]  ;;  %v2153_v6 = vld [vmem:[#allocation8 + $0x64] sm:$0xf0] }
  0xbd   :  { %v2575_v7 = vmul.f32 %v364_v4, %v2508_v55  ;;  %v369_v8 = vmul.f32 %v2291_v45, %v368_v63  ;;  %v302_v11 = vpop.f32.mrf.mxu3  ;;  %2302 = vrcp.f32 %v2577_v10  ;;  %v378_v18 = vor.u32 1.1754944e-38, %v377_v52  ;;  %v2203_v63 = vld [vmem:[#allocation8 + $0x1f4] sm:$0xf0]  ;;  %v1662_v5 = vld [vmem:[#allocation8 + $0x60] sm:$0xf] }
  0xbe   :  { %v464_v12 = vmul.f32 %v2570_v3, %v2570_v3  ;;  %v384_v15 = vmul.f32 %v2293_v56, %v383_v9  ;;  %2304 = vrcp.f32 %v2581_v53  ;;  %v405_v26 = vand.u32 2147483647, %v2577_v10  ;;  %v1726_v11 = vld [vmem:[#allocation8 + $0xe0] sm:$0xf] }
  0xbf   :  { %v370_v14 = vadd.f32 %v2291_v45, %v369_v8  ;;  %v2299_v55 = vpop.eup %2298  ;;  %v465_v17 = vmul.f32 %v2575_v7, %v2575_v7  ;;  %v407_v32 = vand.u32 2147483648, %v2577_v10  ;;  %vm401_vm2 = vweird.f32 %v2577_v10 }
  0xc0   :  { %v385_v21 = vadd.f32 %v2293_v56, %v384_v15  ;;  %v2301_v24 = vpop.eup %2300  ;;  %v473_v29 = vsel %vm472_vm7, %v464_v12, 0.0  ;;  %v420_v23 = vand.u32 2147483647, %v2581_v53  ;;  %v2608_v35 = vadd.f32 1.0, %v2299_v55  ;;  %v2169_v12 = vld [vmem:[#allocation8 + $0xe4] sm:$0xf0] }
  0xc1   :  { %v374_v20 = vsel %vm373_vm14, %v2291_v45, %v370_v14  ;;  %v474_v33 = vsel %vm472_vm7, %v465_v17, 0.0  ;;  %v2617_v38 = vadd.f32 1.0, %v2301_v24  ;;  %vm2621_vm3 = vcmp.eq.f32.partialorder %v405_v26, 8.507059e+37  ;;  %v1734_v45 = vld [vmem:[#allocation8 + $0xf0] sm:$0xf] }
  0xc2   :  { %v379_v25 = vsel %vm376_vm15, %v378_v18, %v374_v20  ;;  %v389_v31 = vsel %vm388_vm1, %v2293_v56, %v385_v21  ;;  %v422_v43 = vand.u32 2147483648, %v2581_v53  ;;  %2306 = vrcp.f32 %v2608_v35  ;;  %v2185_v20 = vld [vmem:[#allocation8 + $0x164] sm:$0xf0]  ;;  %v1854_v21 = vld [vmem:[#allocation8 + $0x1e0] sm:$0xf] }
  0xc3   :  { %v2600_v30 = vmul.f32 %v379_v25, %v2514_v61  ;;  %v394_v34 = vsel %vm2589_vm0, %v393_v22, %v389_v31  ;;  %v2610_v36 = vpop.eup %2302  ;;  %v475_v47 = vadd.f32 %v474_v33, %v473_v29  ;;  %v408_v49 = vor.u32 1.1754944e-38, %v407_v32  ;;  %v1654_v29 = vld [vmem:[#allocation8 + $0x50] sm:$0xf]  ;;  %v2179_v26 = vld [vmem:[#allocation8 + $0x134] sm:$0xf0] }
  0xc4   :  { %v2615_v37 = vmul.f32 %v394_v34, %v2516_v0  ;;  %v397_v40 = vmul.f32 %v2610_v36, %v2577_v10  ;;  %v2627_v46 = vpop.eup %2304  ;;  %vm416_vm4 = vweird.f32 %v2581_v53  ;;  %vm2635_vm5 = vcmp.eq.f32.partialorder %v420_v23, 8.507059e+37  ;;  %v2151_v34 = vld [vmem:[#allocation8 + $0x54] sm:$0xf0]  ;;  %v1718_v23 = vld [vmem:[#allocation8 + $0xd0] sm:$0xf] }
  0xc5   :  { %v466_v61 = vmul.f32 %v2600_v30, %v2600_v30  ;;  %v412_v54 = vmul.f32 %v2627_v46, %v2581_v53  ;;  %v435_v60 = vand.u32 2147483647, %v2608_v35  ;;  %v437_v62 = vand.u32 2147483648, %v2608_v35  ;;  %v2199_v53 = vld [vmem:[#allocation8 + $0x1d4] sm:$0xf0] }
  0xc6   :  { %v467_v48 = vmul.f32 %v2615_v37, %v2615_v37  ;;  %v398_v52 = vsub.f32 1.0, %v397_v40  ;;  %2308 = vrcp.f32 %v2617_v38  ;;  %vm402_vm6 = vweird.f32 %v2610_v36 }
  0xc7   :  { %v476_v0 = vsel %vm472_vm7, %v466_v61, 0.0  ;;  %v413_v2 = vsub.f32 1.0, %v412_v54  ;;  %v423_v4 = vor.u32 1.1754944e-38, %v422_v43  ;;  %vm417_vm8 = vweird.f32 %v2627_v46  ;;  %vm2657_vm10 = vmor %vm401_vm2, %vm402_vm6 }
  0xc8   :  { %v477_v59 = vadd.f32 %v476_v0, %v475_v47  ;;  %v399_v1 = vmul.f32 %v2610_v36, %v398_v52  ;;  %v478_v8 = vsel %vm472_vm7, %v467_v48, 0.0  ;;  %vm431_vm9 = vweird.f32 %v2608_v35  ;;  %v2647_v14 = vpop.eup %2306  ;;  %vm418_vm12 = vmor %vm416_vm4, %vm417_vm8  ;;  %v1782_v47 = vld [vmem:[#allocation8 + $0x150] sm:$0xf] }
  0xc9   :  { %v1735_v9 = vor.u32 %v2171_v50, %v1734_v45  ;;  %v414_v55 = vmul.f32 %v2627_v46, %v413_v2  ;;  %v1799_v17 = vor.u32 %v2187_v57, %v1798_v51  ;;  %v1863_v18 = vor.u32 %v2203_v63, %v1862_v58  ;;  %v2167_v45 = vld [vmem:[#allocation8 + $0xd4] sm:$0xf0]  ;;  %v1846_v50 = vld [vmem:[#allocation8 + $0x1d0] sm:$0xf]  ;;  %v1646_v57 = vld [vmem:[#allocation8 + $0x40] sm:$0xf] }
  0xca   :  { %v400_v15 = vadd.f32 %v2610_v36, %v399_v1  ;;  %v2651_v22 = vadd.f32 %v478_v8, %v477_v59  ;;  %v427_v25 = vmul.f32 %v2647_v14, %v2608_v35  ;;  %vm2663_vm11 = vcmp.eq.f32.partialorder %v435_v60, 8.507059e+37  ;;  %v2149_v58 = vld [vmem:[#allocation8 + $0x44] sm:$0xf0]  ;;  %v1710_v63 = vld [vmem:[#allocation8 + $0xc0] sm:$0xf] }
  0xcb   :  { %v2667_v27 = vor.u32 1.1754944e-38, %v437_v62  ;;  %1312 = vmatpush.bf16.msra.mxu1 %v1735_v9  ;;  %v415_v31 = vadd.f32 %v2627_v46, %v414_v55  ;;  %v450_v32 = vand.u32 2147483647, %v2617_v38  ;;  %1325 = vmatpush.bf16.msra.mxu2 %v1799_v17  ;;  %v1663_v33 = vor.u32 %v2153_v6, %v1662_v5  ;;  %v2165_v1 = vld [vmem:[#allocation8 + $0xc4] sm:$0xf0] }
  0xcc   :  { %v404_v10 = vsel %vm2657_vm10, %v2610_v36, %v400_v15  ;;  %1338 = vmatpush.bf16.msra.mxu3 %v1863_v18  ;;  %v2674_v61 = vpop.eup %2308  ;;  %v428_v36 = vsub.f32 1.0, %v427_v25  ;;  %v1727_v40 = vor.u32 %v2169_v12, %v1726_v11  ;;  %v1791_v43 = vor.u32 %v2185_v20, %v1790_v19  ;;  %v1774_v6 = vld [vmem:[#allocation8 + $0x140] sm:$0xf]  ;;  %v2181_v8 = vld [vmem:[#allocation8 + $0x144] sm:$0xf0] }
  0xcd   :  { %v409_v39 = vsel %vm2621_vm3, %v408_v49, %v404_v10  ;;  %v419_v48 = vsel %vm418_vm12, %v2627_v46, %v415_v31  ;;  %vm432_vm13 = vweird.f32 %v2647_v14  ;;  %v442_v42 = vmul.f32 %v2674_v61, %v2617_v38  ;;  %1300 = vmatpush.bf16.msra.mxu0 %v1663_v33  ;;  %v2183_v49 = vld [vmem:[#allocation8 + $0x154] sm:$0xf0]  ;;  %v1838_v12 = vld [vmem:[#allocation8 + $0x1c0] sm:$0xf]  ;;  %v2197_v15 = vld [vmem:[#allocation8 + $0x1c4] sm:$0xf0] }
  0xce   :  { %v2683_v0 = vmul.f32 %v409_v39, %v2525_v13  ;;  %v424_v51 = vsel %vm2635_vm5, %v423_v4, %v419_v48  ;;  %v429_v52 = vmul.f32 %v2647_v14, %v428_v36  ;;  %v1855_v54 = vor.u32 %v2201_v28, %v1854_v21  ;;  %vm433_vm14 = vmor %vm431_vm9, %vm432_vm13  ;;  %v1638_v19 = vld [vmem:[#allocation8 + $0x30] sm:$0xf]  ;;  %v2147_v35 = vld [vmem:[#allocation8 + $0x34] sm:$0xf0] }
  0xcf   :  { %1313 = vmatpush.bf16.msra.mxu1 %v1727_v40  ;;  %v1655_v13 = vor.u32 %v2151_v34, %v1654_v29  ;;  %v2695_v59 = vmul.f32 %v424_v51, %v2527_v16  ;;  %v443_v60 = vsub.f32 1.0, %v442_v42  ;;  %1326 = vmatpush.bf16.msra.mxu2 %v1791_v43  ;;  %v1719_v62 = vor.u32 %v2167_v45, %v1718_v23  ;;  %v1702_v28 = vld [vmem:[#allocation8 + $0xb0] sm:$0xf]  ;;  %v2163_v29 = vld [vmem:[#allocation8 + $0xb4] sm:$0xf0] }
  0xd0   :  { %v468_v46 = vmul.f32 %v2683_v0, %v2683_v0  ;;  %v430_v56 = vadd.f32 %v2647_v14, %v429_v52  ;;  %v452_v2 = vand.u32 2147483648, %v2617_v38  ;;  %1339 = vmatpush.bf16.msra.mxu3 %v1855_v54  ;;  %v1783_v4 = vor.u32 %v2183_v49, %v1782_v47  ;;  %v1766_v33 = vld [vmem:[#allocation8 + $0x130] sm:$0xf]  ;;  %v2195_v23 = vld [vmem:[#allocation8 + $0x1b4] sm:$0xf0] }
  0xd1   :  { %v1847_v5 = vor.u32 %v2199_v53, %v1846_v50  ;;  %v444_v16 = vmul.f32 %v2674_v61, %v443_v60  ;;  %vm447_vm15 = vweird.f32 %v2674_v61  ;;  %1301 = vmatpush.bf16.msra.mxu0 %v1655_v13  ;;  %v1647_v11 = vor.u32 %v2149_v58, %v1646_v57  ;;  %v1830_v34 = vld [vmem:[#allocation8 + $0x1b0] sm:$0xf]  ;;  %v1630_v43 = vld [vmem:[#allocation8 + $0x20] sm:$0xf]  ;;  %v2145_v45 = vld [vmem:[#allocation8 + $0x24] sm:$0xf0] }
  0xd2   :  { %v480_v9 = vsel %vm472_vm7, %v468_v46, 0.0  ;;  %v469_v55 = vmul.f32 %v2695_v59, %v2695_v59  ;;  %v434_v17 = vsel %vm433_vm14, %v2647_v14, %v430_v56  ;;  %vm446_vm0 = vweird.f32 %v2617_v38  ;;  %v2161_v48 = vld [vmem:[#allocation8 + $0xa4] sm:$0xf0]  ;;  %v1758_v50 = vld [vmem:[#allocation8 + $0x120] sm:$0xf] }
  0xd3   :  { %1314 = vmatpush.bf16.msra.mxu1 %v1719_v62  ;;  %v1711_v18 = vor.u32 %v2165_v1, %v1710_v63  ;;  %v439_v20 = vsel %vm2663_vm11, %v2667_v27, %v434_v17  ;;  %v445_v21 = vadd.f32 %v2674_v61, %v444_v16  ;;  %v481_v24 = vadd.f32 %v480_v9, %v2651_v22  ;;  %vm448_vm1 = vmor %vm446_vm0, %vm447_vm15  ;;  %v2177_v53 = vld [vmem:[#allocation8 + $0x124] sm:$0xf0]  ;;  %v1822_v13 = vld [vmem:[#allocation8 + $0x1a0] sm:$0xf] }
  0xd4   :  { %1327 = vmatpush.bf16.msra.mxu2 %v1783_v4  ;;  %v1775_v25 = vor.u32 %v2181_v8, %v1774_v6  ;;  %v2716_v14 = vmul.f32 %v439_v20, %v2551_v41  ;;  %v453_v10 = vor.u32 1.1754944e-38, %v452_v2  ;;  %1340 = vmatpush.bf16.msra.mxu3 %v1847_v5  ;;  %v1839_v31 = vor.u32 %v2197_v15, %v1838_v12  ;;  %v1622_v58 = vld [vmem:[#allocation8 + $0x10] sm:$0xf]  ;;  %v2143_v46 = vld [vmem:[#allocation8 + $0x14] sm:$0xf0] }
  0xd5   :  { %v449_v27 = vsel %vm448_vm1, %v2674_v61, %v445_v21  ;;  %vm451_vm2 = vcmp.eq.f32.partialorder %v450_v32, 8.507059e+37  ;;  %1302 = vmatpush.bf16.msra.mxu0 %v1647_v11  ;;  %v1639_v22 = vor.u32 %v2147_v35, %v1638_v19  ;;  %v482_v36 = vsel %vm472_vm7, %v469_v55, 0.0  ;;  %v1694_v32 = vld [vmem:[#allocation8 + $0xa0] sm:$0xf]  ;;  %v1686_v63 = vld [vmem:[#allocation8 + $0x90] sm:$0xf] }
  0xd6   :  { %v470_v41 = vmul.f32 %v2716_v14, %v2716_v14  ;;  %v454_v39 = vsel %vm451_vm2, %v453_v10, %v449_v27  ;;  %v1703_v40 = vor.u32 %v2163_v29, %v1702_v28  ;;  %v483_v61 = vadd.f32 %v482_v36, %v481_v24  ;;  %v2159_v1 = vld [vmem:[#allocation8 + $0x94] sm:$0xf0]  ;;  %v1750_v4 = vld [vmem:[#allocation8 + $0x110] sm:$0xf]  ;;  %v1614_v16 = vld [vmem:[#allocation8] sm:$0xf] }
  0xd7   :  { %1315 = vmatpush.bf16.msra.mxu1 %v1711_v18  ;;  %v2727_v47 = vmul.f32 %v454_v39, %v2553_v44  ;;  %v1767_v38 = vor.u32 %v2179_v26, %v1766_v33  ;;  %v1831_v49 = vor.u32 %v2195_v23, %v1830_v34  ;;  %v1631_v54 = vor.u32 %v2145_v45, %v1630_v43  ;;  %v2193_v44 = vld [vmem:[#allocation8 + $0x1a4] sm:$0xf0]  ;;  %v2175_v5 = vld [vmem:[#allocation8 + $0x114] sm:$0xf0]  ;;  %v1814_v6 = vld [vmem:[#allocation8 + $0x190] sm:$0xf] }
  0xd8   :  { %1328 = vmatpush.bf16.msra.mxu2 %v1775_v25  ;;  %v484_v42 = vsel %vm472_vm7, %v470_v41, 0.0  ;;  %1341 = vmatpush.bf16.msra.mxu3 %v1839_v31  ;;  %v1695_v57 = vor.u32 %v2161_v48, %v1694_v32  ;;  %v1759_v62 = vor.u32 %v2177_v53, %v1758_v50  ;;  %v1823_v2 = vor.u32 %v2193_v44, %v1822_v13  ;;  %v2191_v9 = vld [vmem:[#allocation8 + $0x194] sm:$0xf0]  ;;  %v2141_v11 = vld [vmem:[#allocation8 + $0x4] sm:$0xf0] }
  0xd9   :  { %v471_v51 = vmul.f32 %v2727_v47, %v2727_v47  ;;  %v485_v52 = vadd.f32 %v484_v42, %v483_v61  ;;  %1303 = vmatpush.bf16.msra.mxu0 %v1639_v22  ;;  %v1623_v8 = vor.u32 %v2143_v46, %v1622_v58  ;;  %v1687_v12 = vor.u32 %v2159_v1, %v1686_v63  ;;  %v1678_v15 = vld [vmem:[#allocation8 + $0x80] sm:$0xf]  ;;  %v2157_v55 = vld [vmem:[#allocation8 + $0x84] sm:$0xf0]  ;;  %v1926_v35 = vld [vmem:[#allocation8 + $0x270] sm:$0xf] }
  0xda   :  { %v1742_v17 = vld [vmem:[#allocation8 + $0x100] sm:$0xf]  ;;  %v1751_v18 = vor.u32 %v2175_v5, %v1750_v4  ;;  %v2173_v19 = vld [vmem:[#allocation8 + $0x104] sm:$0xf0]  ;;  %v2219_v20 = vld [vmem:[#allocation8 + $0x274] sm:$0xf0]  ;;  %v1815_v21 = vor.u32 %v2191_v9, %v1814_v6  ;;  %v1615_v29 = vor.u32 %v2141_v11, %v1614_v16  ;;  %v1679_v26 = vor.u32 %v2157_v55, %v1678_v15 }
  0xdb   :  { %1316 = vmatpush.bf16.msra.mxu1 %v1703_v40  ;;  %v486_v60 = vsel %vm472_vm7, %v471_v51, 0.0  ;;  %v1806_v24 = vld [vmem:[#allocation8 + $0x180] sm:$0xf]  ;;  %v1990_v25 = vld [vmem:[#allocation8 + $0x2f0] sm:$0xf]  ;;  %v1927_v27 = vor.u32 %v2219_v20, %v1926_v35  ;;  %v1743_v23 = vor.u32 %v2173_v19, %v1742_v17 }
  0xdc   :  { %1329 = vmatpush.bf16.msra.mxu2 %v1767_v38  ;;  %v487_v56 = vadd.f32 %v486_v60, %v485_v52  ;;  %1342 = vmatpush.bf16.msra.mxu3 %v1831_v49  ;;  %v2235_v28 = vld [vmem:[#allocation8 + $0x2f4] sm:$0xf0]  ;;  %v2189_v10 = vld [vmem:[#allocation8 + $0x184] sm:$0xf0]  ;;  %v2054_v31 = vld [vmem:[#allocation8 + $0x370] sm:$0xf] }
  0xdd   :  { %1304 = vmatpush.bf16.msra.mxu0 %v1631_v54  ;;  %v2251_v33 = vld [vmem:[#allocation8 + $0x374] sm:$0xf0]  ;;  %v2118_v22 = vld [vmem:[#allocation8 + $0x3f0] sm:$0xf]  ;;  %v1991_v41 = vor.u32 %v2235_v28, %v1990_v25  ;;  %v1807_v39 = vor.u32 %v2189_v10, %v1806_v24  ;;  %v1918_v43 = vld [vmem:[#allocation8 + $0x260] sm:$0xf] }
  0xde   :  { %488 = vadd.xlane.f32.xlu0 %v487_v56  ;;  %v2267_v34 = vld [vmem:[#allocation8 + $0x3f4] sm:$0xf0]  ;;  %v2055_v36 = vor.u32 %v2251_v33, %v2054_v31  ;;  %v2217_v45 = vld [vmem:[#allocation8 + $0x264] sm:$0xf0]  ;;  %v1982_v61 = vld [vmem:[#allocation8 + $0x2e0] sm:$0xf] }
  0xdf   :  { %1317 = vmatpush.bf16.msra.mxu1 %v1695_v57  ;;  %v2119_v40 = vor.u32 %v2267_v34, %v2118_v22  ;;  %v1919_v38 = vor.u32 %v2217_v45, %v1918_v43  ;;  %v2233_v32 = vld [vmem:[#allocation8 + $0x2e4] sm:$0xf0]  ;;  %v2046_v48 = vld [vmem:[#allocation8 + $0x360] sm:$0xf]  ;;  %v2450_v49 = vmov 1024.0  }
  0xe0   :  { %1330 = vmatpush.bf16.msra.mxu2 %v1759_v62  ;;  %1343 = vmatpush.bf16.msra.mxu3 %v1823_v2  ;;  %v2249_v42 = vld [vmem:[#allocation8 + $0x364] sm:$0xf0]  ;;  %2310 = vrcp.f32 %v2450_v49  ;;  %v1983_v50 = vor.u32 %v2233_v32, %v1982_v61  ;;  %v2110_v51 = vld [vmem:[#allocation8 + $0x3e0] sm:$0xf]  ;;  %v1910_v13 = vld [vmem:[#allocation8 + $0x250] sm:$0xf] }
  0xe1   :  { %1305 = vmatpush.bf16.msra.mxu0 %v1623_v8  ;;  %v2047_v53 = vor.u32 %v2249_v42, %v2046_v48  ;;  %v2265_v52 = vld [vmem:[#allocation8 + $0x3e4] sm:$0xf0]  ;;  %v2215_v44 = vld [vmem:[#allocation8 + $0x254] sm:$0xf0]  ;;  %v1974_v57 = vld [vmem:[#allocation8 + $0x2d0] sm:$0xf] }
  0xe2   :  { %v2111_v54 = vor.u32 %v2265_v52, %v2110_v51  ;;  %v1911_v58 = vor.u32 %v2215_v44, %v1910_v13  ;;  %v2231_v46 = vld [vmem:[#allocation8 + $0x2d4] sm:$0xf0]  ;;  %v2038_v60 = vld [vmem:[#allocation8 + $0x350] sm:$0xf]  ;;  %v1902_v6 = vld [vmem:[#allocation8 + $0x240] sm:$0xf] }
  0xe3   :  { %1318 = vmatpush.bf16.msra.mxu1 %v1687_v12  ;;  %v2247_v62 = vld [vmem:[#allocation8 + $0x354] sm:$0xf0]  ;;  %v1975_v63 = vor.u32 %v2231_v46, %v1974_v57  ;;  %v2102_v56 = vld [vmem:[#allocation8 + $0x3d0] sm:$0xf]  ;;  %v2213_v8 = vld [vmem:[#allocation8 + $0x244] sm:$0xf0] }
  0xe4   :  { %1331 = vmatpush.bf16.msra.mxu2 %v1751_v18  ;;  %1344 = vmatpush.bf16.msra.mxu3 %v1815_v21  ;;  %v2039_v1 = vor.u32 %v2247_v62, %v2038_v60  ;;  %v2263_v2 = vld [vmem:[#allocation8 + $0x3d4] sm:$0xf0]  ;;  %v1966_v9 = vld [vmem:[#allocation8 + $0x2c0] sm:$0xf]  ;;  %v1903_v16 = vor.u32 %v2213_v8, %v1902_v6  ;;  %v2229_v11 = vld [vmem:[#allocation8 + $0x2c4] sm:$0xf0] }
  0xe5   :  { %1306 = vmatpush.bf16.msra.mxu0 %v1615_v29  ;;  %v2103_v4 = vor.u32 %v2263_v2, %v2102_v56  ;;  %v2030_v12 = vld [vmem:[#allocation8 + $0x340] sm:$0xf]  ;;  %v2245_v15 = vld [vmem:[#allocation8 + $0x344] sm:$0xf0]  ;;  %v1967_v55 = vor.u32 %v2229_v11, %v1966_v9  ;;  %v1894_v21 = vld [vmem:[#allocation8 + $0x230] sm:$0xf] }
  0xe6   :  { %v2733_v5 = vpop.eup %2310  ;;  %v2031_v17 = vor.u32 %v2245_v15, %v2030_v12  ;;  %v2094_v18 = vld [vmem:[#allocation8 + $0x3c0] sm:$0xf]  ;;  %v2261_v19 = vld [vmem:[#allocation8 + $0x3c4] sm:$0xf0]  ;;  %v2211_v24 = vld [vmem:[#allocation8 + $0x234] sm:$0xf0] }
  0xe7   :  { %1319 = vmatpush.bf16.msra.mxu1 %v1679_v26  ;;  %v491_v35 = vmul.f32 1024.0, %v2733_v5  ;;  %v2095_v20 = vor.u32 %v2261_v19, %v2094_v18  ;;  %v1958_v25 = vld [vmem:[#allocation8 + $0x2b0] sm:$0xf]  ;;  %v1895_v28 = vor.u32 %v2211_v24, %v1894_v21  ;;  %v2227_v29 = vld [vmem:[#allocation8 + $0x2b4] sm:$0xf0]  ;;  %vm495_vm3 = vweird.f32 %v2733_v5 }
  0xe8   :  { %1332 = vmatpush.bf16.msra.mxu2 %v1743_v23  ;;  %1345 = vmatpush.bf16.msra.mxu3 %v1807_v39  ;;  %v2022_v10 = vld [vmem:[#allocation8 + $0x330] sm:$0xf]  ;;  %v2243_v31 = vld [vmem:[#allocation8 + $0x334] sm:$0xf0]  ;;  %v1959_v33 = vor.u32 %v2227_v29, %v1958_v25  ;;  %v2209_v39 = vld [vmem:[#allocation8 + $0x224] sm:$0xf0] }
  0xe9   :  { %1351 = vmatpush.bf16.msrb.mxu0 %v1927_v27  ;;  %v2023_v26 = vor.u32 %v2243_v31, %v2022_v10  ;;  %v2086_v27 = vld [vmem:[#allocation8 + $0x3b0] sm:$0xf]  ;;  %v2259_v22 = vld [vmem:[#allocation8 + $0x3b4] sm:$0xf0]  ;;  %v492_v34 = vsub.f32 1.0, %v491_v35 }
  0xea   :  { %v2087_v23 = vor.u32 %v2259_v22, %v2086_v27  ;;  %v2225_v43 = vld [vmem:[#allocation8 + $0x2a4] sm:$0xf0]  ;;  %v2014_v45 = vld [vmem:[#allocation8 + $0x320] sm:$0xf]  ;;  %v1942_v51 = vld [vmem:[#allocation8 + $0x290] sm:$0xf] }
  0xeb   :  { %1364 = vmatpush.bf16.msrb.mxu1 %v1991_v41  ;;  %v1886_v41 = vld [vmem:[#allocation8 + $0x220] sm:$0xf]  ;;  %v2241_v61 = vld [vmem:[#allocation8 + $0x324] sm:$0xf0]  ;;  %v493_v52 = vmul.f32 %v2733_v5, %v492_v34  ;;  %v2223_v13 = vld [vmem:[#allocation8 + $0x294] sm:$0xf0] }
  0xec   :  { %1377 = vmatpush.bf16.msrb.mxu2 %v2055_v36  ;;  %1390 = vmatpush.bf16.msrb.mxu3 %v2119_v40  ;;  %v1950_v36 = vld [vmem:[#allocation8 + $0x2a0] sm:$0xf]  ;;  %v1887_v40 = vor.u32 %v2209_v39, %v1886_v41  ;;  %v2015_v32 = vor.u32 %v2241_v61, %v2014_v45  ;;  %v2257_v42 = vld [vmem:[#allocation8 + $0x3a4] sm:$0xf0]  ;;  %v2006_v44 = vld [vmem:[#allocation8 + $0x310] sm:$0xf] }
  0xed   :  { %1352 = vmatpush.bf16.msrb.mxu0 %v1919_v38  ;;  %v1951_v38 = vor.u32 %v2225_v43, %v1950_v36  ;;  %v2078_v48 = vld [vmem:[#allocation8 + $0x3a0] sm:$0xf]  ;;  %v2239_v57 = vld [vmem:[#allocation8 + $0x314] sm:$0xf0]  ;;  %v2070_v60 = vld [vmem:[#allocation8 + $0x390] sm:$0xf]  ;;  %v494_v12 = vadd.f32 %v2733_v5, %v493_v52 }
  0xee   :  { %v2079_v49 = vor.u32 %v2257_v42, %v2078_v48  ;;  %v2007_v46 = vor.u32 %v2239_v57, %v2006_v44  ;;  %v2255_v62 = vld [vmem:[#allocation8 + $0x394] sm:$0xf0]  ;;  %v2205_v56 = vld [vmem:[#allocation8 + $0x204] sm:$0xf0]  ;;  %v1934_v2 = vld [vmem:[#allocation8 + $0x280] sm:$0xf] }
  0xef   :  { %1365 = vmatpush.bf16.msrb.mxu1 %v1983_v50  ;;  %v1878_v50 = vld [vmem:[#allocation8 + $0x210] sm:$0xf]  ;;  %v1998_v9 = vld [vmem:[#allocation8 + $0x300] sm:$0xf]  ;;  %v496_v18 = vsel %vm495_vm3, %v2733_v5, %v494_v12  ;;  %v2154_v31 = vld [vmem:[#allocation8 + $0x74] sm:$0xf] }
  0xf0   :  { %1378 = vmatpush.bf16.msrb.mxu2 %v2047_v53  ;;  %1391 = vmatpush.bf16.msrb.mxu3 %v2111_v54  ;;  %v2207_v53 = vld [vmem:[#allocation8 + $0x214] sm:$0xf0]  ;;  %v2062_v11 = vld [vmem:[#allocation8 + $0x380] sm:$0xf]  ;;  %v1736_v27 = vld [vmem:[#allocation8 + $0xf8] sm:$0xf0] }
  0xf1   :  { %1353 = vmatpush.bf16.msrb.mxu0 %v1911_v58  ;;  %v1879_v54 = vor.u32 %v2207_v53, %v1878_v50  ;;  %v1943_v58 = vor.u32 %v2223_v13, %v1942_v51  ;;  %v2186_v5 = vld [vmem:[#allocation8 + $0x174] sm:$0xf]  ;;  %v1800_v36 = vld [vmem:[#allocation8 + $0x178] sm:$0xf0]  ;;  %v1664_v42 = vld [vmem:[#allocation8 + $0x68] sm:$0xf0] }
  0xf2   :  { %v1864_v43 = vld [vmem:[#allocation8 + $0x1f8] sm:$0xf0]  ;;  %v2168_v50 = vld [vmem:[#allocation8 + $0xe4] sm:$0xf]  ;;  %v1728_v53 = vld [vmem:[#allocation8 + $0xe8] sm:$0xf0] }
  0xf3   :  { %1366 = vmatpush.bf16.msrb.mxu1 %v1975_v63  ;;  %v1870_v63 = vld [vmem:[#allocation8 + $0x200] sm:$0xf]  ;;  %v1792_v51 = vld [vmem:[#allocation8 + $0x168] sm:$0xf0]  ;;  %v2200_v52 = vld [vmem:[#allocation8 + $0x1e4] sm:$0xf]  ;;  %v1731_v44 = vor.u32 %v2168_v50, %v1728_v53 }
  0xf4   :  { %1379 = vmatpush.bf16.msrb.mxu2 %v2039_v1  ;;  %1392 = vmatpush.bf16.msrb.mxu3 %v2103_v4  ;;  %v2071_v1 = vor.u32 %v2255_v62, %v2070_v60  ;;  %v2221_v4 = vld [vmem:[#allocation8 + $0x284] sm:$0xf0]  ;;  %v1871_v6 = vor.u32 %v2205_v56, %v1870_v63  ;;  %v2150_v57 = vld [vmem:[#allocation8 + $0x54] sm:$0xf]  ;;  %v1720_v63 = vld [vmem:[#allocation8 + $0xd8] sm:$0xf0] }
  0xf5   :  { %1354 = vmatpush.bf16.msrb.mxu0 %v1903_v16  ;;  %v1935_v8 = vor.u32 %v2221_v4, %v1934_v2  ;;  %v2237_v16 = vld [vmem:[#allocation8 + $0x304] sm:$0xf0]  ;;  %v2166_v62 = vld [vmem:[#allocation8 + $0xd4] sm:$0xf]  ;;  %v1784_v56 = vld [vmem:[#allocation8 + $0x158] sm:$0xf0] }
  0xf6   :  { %v1999_v15 = vor.u32 %v2237_v16, %v1998_v9  ;;  %v2198_v2 = vld [vmem:[#allocation8 + $0x1d4] sm:$0xf]  ;;  %v1848_v4 = vld [vmem:[#allocation8 + $0x1d8] sm:$0xf0]  ;;  %v1723_v9 = vor.u32 %v2166_v62, %v1720_v63  ;;  %v1648_v16 = vld [vmem:[#allocation8 + $0x48] sm:$0xf0] }
  0xf7   :  { %1367 = vmatpush.bf16.msrb.mxu1 %v1967_v55  ;;  %v2253_v55 = vld [vmem:[#allocation8 + $0x384] sm:$0xf0]  ;;  %v1712_v12 = vld [vmem:[#allocation8 + $0xc8] sm:$0xf0]  ;;  %v2192_v50 = vld [vmem:[#allocation8 + $0x1a4] sm:$0xf] }
  0xf8   :  { %1380 = vmatpush.bf16.msrb.mxu2 %v2031_v17  ;;  %1393 = vmatpush.bf16.msrb.mxu3 %v2095_v20  ;;  %v2063_v17 = vor.u32 %v2253_v55, %v2062_v11  ;;  %v2164_v11 = vld [vmem:[#allocation8 + $0xc4] sm:$0xf]  ;;  %v1851_v55 = vor.u32 %v2198_v2, %v1848_v4  ;;  %v1824_v53 = vld [vmem:[#allocation8 + $0x1a8] sm:$0xf0]  ;;  %v2190_v62 = vld [vmem:[#allocation8 + $0x194] sm:$0xf] }
  0xf9   :  { %1355 = vmatpush.bf16.msrb.mxu0 %v1895_v28  ;;  %v1816_v63 = vld [vmem:[#allocation8 + $0x198] sm:$0xf0]  ;;  %v1616_v4 = vld [vmem:[#allocation8 + $0x8] sm:$0xf0] }
  0xfb   :  { %1368 = vmatpush.bf16.msrb.mxu1 %v1959_v33  ;;  %v1672_v33 = vld [vmem:[#allocation8 + $0x78] sm:$0xf0] }
  0xfc   :  { %1381 = vmatpush.bf16.msrb.mxu2 %v2023_v26  ;;  %1394 = vmatpush.bf16.msrb.mxu3 %v2087_v23  ;;  %v2170_v26 = vld [vmem:[#allocation8 + $0xf4] sm:$0xf]  ;;  %v1675_v45 = vor.u32 %v2154_v31, %v1672_v33  ;;  %v1704_v33 = vld [vmem:[#allocation8 + $0xb8] sm:$0xf0] }
  0xfd   :  { %1356 = vmatpush.bf16.msrb.mxu0 %v1887_v40  ;;  %v2202_v40 = vld [vmem:[#allocation8 + $0x1f4] sm:$0xf]  ;;  %v1739_v61 = vor.u32 %v2170_v26, %v1736_v27 }
  0xfe   :  { %v2162_v31 = vld [vmem:[#allocation8 + $0xb4] sm:$0xf] }
  0xff   :  { %1369 = vmatpush.bf16.msrb.mxu1 %v1951_v38 }
 0x100   :  { %1382 = vmatpush.bf16.msrb.mxu2 %v2015_v32  ;;  %1395 = vmatpush.bf16.msrb.mxu3 %v2079_v49  ;;  %v1803_v49 = vor.u32 %v2186_v5, %v1800_v36  ;;  %v1707_v36 = vor.u32 %v2162_v31, %v1704_v33 }
 0x101   :  { %1357 = vmatpush.bf16.msrb.mxu0 %v1879_v54  ;;  %v1856_v54 = vld [vmem:[#allocation8 + $0x1e8] sm:$0xf0] }
 0x102   :  { %v1859_v60 = vor.u32 %v2200_v52, %v1856_v54  ;;  %v2142_v52 = vld [vmem:[#allocation8 + $0x14] sm:$0xf]  ;;  %v1624_v54 = vld [vmem:[#allocation8 + $0x18] sm:$0xf0] }
 0x103   :  { %1370 = vmatpush.bf16.msrb.mxu1 %v1943_v58  ;;  %v1656_v58 = vld [vmem:[#allocation8 + $0x58] sm:$0xf0] }
 0x104   :  { %1383 = vmatpush.bf16.msrb.mxu2 %v2007_v46  ;;  %1396 = vmatpush.bf16.msrb.mxu3 %v2071_v1  ;;  %v2182_v1 = vld [vmem:[#allocation8 + $0x154] sm:$0xf] }
 0x105   :  { %1358 = vmatpush.bf16.msrb.mxu0 %v1871_v6  ;;  %v2148_v6 = vld [vmem:[#allocation8 + $0x44] sm:$0xf] }
 0x107   :  { %1371 = vmatpush.bf16.msrb.mxu1 %v1935_v8  ;;  %v1659_v8 = vor.u32 %v2150_v57, %v1656_v58  ;;  %v2158_v57 = vld [vmem:[#allocation8 + $0x94] sm:$0xf]  ;;  %v1688_v58 = vld [vmem:[#allocation8 + $0x98] sm:$0xf0] }
 0x108   :  { %1384 = vmatpush.bf16.msrb.mxu2 %v1999_v15  ;;  %1397 = vmatpush.bf16.msrb.mxu3 %v2063_v17  ;;  %v1787_v15 = vor.u32 %v2182_v1, %v1784_v56  ;;  %v2180_v17 = vld [vmem:[#allocation8 + $0x144] sm:$0xf]  ;;  %v1627_v56 = vor.u32 %v2142_v52, %v1624_v54  ;;  %v1691_v2 = vor.u32 %v2158_v57, %v1688_v58  ;;  %v2262_v52 = vld [vmem:[#allocation8 + $0x3d4] sm:$0xf]  ;;  %v2104_v54 = vld [vmem:[#allocation8 + $0x3d8] sm:$0xf0] }
 0x109   :  { %v2140_v1 = vld [vmem:[#allocation8 + $0x4] sm:$0xf]  ;;  %v1904_v58 = vld [vmem:[#allocation8 + $0x248] sm:$0xf0] }
 0x10a   :  { %v2212_v57 = vld [vmem:[#allocation8 + $0x244] sm:$0xf] }
 0x151   :  { %v489_v19 = vpop.xlane.xlu0 %488 }
 0x152   :  { %v497_v35 = vmul.f32 %v496_v18, %v489_v19  ;;  %v1776_v18 = vld [vmem:[#allocation8 + $0x148] sm:$0xf0]  ;;  %v2196_v19 = vld [vmem:[#allocation8 + $0x1c4] sm:$0xf] }
 0x154   :  { %v498_v20 = vadd.f32 1e-06, %v497_v35  ;;  %v1840_v35 = vld [vmem:[#allocation8 + $0x1c8] sm:$0xf0] }
 0x155   :  { %v1843_v26 = vor.u32 %v2196_v19, %v1840_v35  ;;  %v2234_v19 = vld [vmem:[#allocation8 + $0x2f4] sm:$0xf]  ;;  %v1992_v35 = vld [vmem:[#allocation8 + $0x2f8] sm:$0xf0] }
 0x156   :  { %2312 = vrsqrt.f32 %v498_v20  ;;  %vm505_vm5 = vweird.f32 %v498_v20 }
 0x15c   :  { %v2313_v21 = vpop.eup %2312 }
 0x15d   :  { %v500_v24 = vmul.f32 %v2313_v21, %v498_v20  ;;  %vm506_vm4 = vweird.f32 %v2313_v21  ;;  %v1651_v20 = vor.u32 %v2148_v6, %v1648_v16  ;;  %v2156_v6 = vld [vmem:[#allocation8 + $0x84] sm:$0xf]  ;;  %v1819_v16 = vor.u32 %v2190_v62, %v1816_v63  ;;  %v1968_v62 = vld [vmem:[#allocation8 + $0x2c8] sm:$0xf0] }
 0x15e   :  { %vm507_vm6 = vmor %vm505_vm5, %vm506_vm4  ;;  %v2032_v63 = vld [vmem:[#allocation8 + $0x348] sm:$0xf0] }
 0x15f   :  { %v501_v25 = vmul.f32 %v2313_v21, %v500_v24  ;;  %v2146_v24 = vld [vmem:[#allocation8 + $0x34] sm:$0xf] }
 0x161   :  { %v502_v28 = vmul.f32 0.5, %v501_v25  ;;  %v1779_v25 = vor.u32 %v2180_v17, %v1776_v18  ;;  %v2218_v17 = vld [vmem:[#allocation8 + $0x274] sm:$0xf]  ;;  %v1928_v18 = vld [vmem:[#allocation8 + $0x278] sm:$0xf0] }
 0x162   :  { %v1931_v33 = vor.u32 %v2218_v17, %v1928_v18 }
 0x163   :  { %v503_v29 = vsub.f32 1.5, %v502_v28 }
 0x165   :  { %v504_v10 = vmul.f32 %v2313_v21, %v503_v29 }
 0x167   :  { %v2740_v22 = vsel %vm507_vm6, %v2313_v21, %v504_v10  ;;  %v1715_v21 = vor.u32 %v2164_v11, %v1712_v12  ;;  %v1640_v10 = vld [vmem:[#allocation8 + $0x38] sm:$0xf0]  ;;  %v2172_v11 = vld [vmem:[#allocation8 + $0x104] sm:$0xf]  ;;  %v1744_v12 = vld [vmem:[#allocation8 + $0x108] sm:$0xf0] }
 0x168   :  { %v509_v34 = vmul.f32 %v2740_v22, %v2570_v3  ;;  %v510_v23 = vmul.f32 %v2740_v22, %v2575_v7  ;;  %v511_v41 = vmul.f32 %v2740_v22, %v2600_v30  ;;  %v512_v39 = vmul.f32 %v2740_v22, %v2615_v37  ;;  %v2152_v7 = vld [vmem:[#allocation8 + $0x64] sm:$0xf] }
 0x169   :  { %v1867_v30 = vor.u32 %v2202_v40, %v1864_v43  ;;  %v2184_v37 = vld [vmem:[#allocation8 + $0x164] sm:$0xf]  ;;  %v1667_v13 = vor.u32 %v2152_v7, %v1664_v42  ;;  %v513_v28 = vmul.f32 %v2740_v22, %v2683_v0  ;;  %v514_v29 = vmul.f32 %v2740_v22, %v2695_v59  ;;  %v1696_v42 = vld [vmem:[#allocation8 + $0xa8] sm:$0xf0] }
 0x16a   :  { %v2750_v38 = vpack.c.bf16 %v509_v34, %v509_v34  ;;  %v2752_v32 = vpack.c.bf16 %v510_v23, %v510_v23  ;;  %v2754_v48 = vpack.c.bf16 %v511_v41, %v511_v41  ;;  %v2756_v3 = vpack.c.bf16 %v512_v39, %v512_v39  ;;  %v2178_v34 = vld [vmem:[#allocation8 + $0x134] sm:$0xf]  ;;  %v1768_v23 = vld [vmem:[#allocation8 + $0x138] sm:$0xf0]  ;;  %v2160_v7 = vld [vmem:[#allocation8 + $0xa4] sm:$0xf] }
 0x16b   :  { %v1795_v46 = vor.u32 %v2184_v37, %v1792_v51  ;;  %v515_v27 = vmul.f32 %v2740_v22, %v2716_v14  ;;  %v516_v5 = vmul.f32 %v2740_v22, %v2727_v47  ;;  %v2194_v41 = vld [vmem:[#allocation8 + $0x1b4] sm:$0xf]  ;;  %v1832_v39 = vld [vmem:[#allocation8 + $0x1b8] sm:$0xf0]  ;;  %v1643_v0 = vor.u32 %v2146_v24, %v1640_v10 }
 0x16c   :  { %1307 = vmatmul.bf16.vlgmr.msra.gmra.mxu0 %v2750_v38  ;;  %1320 = vmatmul.bf16.vlgmr.msra.gmra.mxu1 %v2752_v32  ;;  %v2770_v59 = vpack.c.bf16 %v513_v28, %v513_v28  ;;  %v2772_v40 = vpack.c.bf16 %v514_v29, %v514_v29  ;;  %v1771_v43 = vor.u32 %v2178_v34, %v1768_v23  ;;  %v2266_v28 = vld [vmem:[#allocation8 + $0x3f4] sm:$0xf]  ;;  %v2120_v29 = vld [vmem:[#allocation8 + $0x3f8] sm:$0xf0] }
 0x16d   :  { %1333 = vmatmul.bf16.vlgmr.msra.gmra.mxu2 %v2754_v48  ;;  %1346 = vmatmul.bf16.vlgmr.msra.gmra.mxu3 %v2756_v3  ;;  %v2774_v14 = vpack.c.bf16 %v515_v27, %v515_v27  ;;  %v2776_v47 = vpack.c.bf16 %v516_v5, %v516_v5  ;;  %v1835_v22 = vor.u32 %v2194_v41, %v1832_v39  ;;  %v2216_v27 = vld [vmem:[#allocation8 + $0x264] sm:$0xf]  ;;  %v1920_v5 = vld [vmem:[#allocation8 + $0x268] sm:$0xf0] }
 0x16e   :  { %1403 = vmatpush.bf16.msra.mxu0 %v1675_v45  ;;  %1416 = vmatpush.bf16.msra.mxu1 %v1739_v61  ;;  %v2144_v45 = vld [vmem:[#allocation8 + $0x24] sm:$0xf]  ;;  %v1632_v61 = vld [vmem:[#allocation8 + $0x28] sm:$0xf0]  ;;  %v1699_v51 = vor.u32 %v2160_v7, %v1696_v42  ;;  %v1747_v10 = vor.u32 %v2172_v11, %v1744_v12  ;;  %v2123_v23 = vor.u32 %v2266_v28, %v2120_v29  ;;  %v2214_v7 = vld [vmem:[#allocation8 + $0x254] sm:$0xf] }
 0x16f   :  { %1429 = vmatpush.bf16.msra.mxu2 %v1803_v49  ;;  %1442 = vmatpush.bf16.msra.mxu3 %v1867_v30  ;;  %v2176_v49 = vld [vmem:[#allocation8 + $0x124] sm:$0xf]  ;;  %v1760_v30 = vld [vmem:[#allocation8 + $0x128] sm:$0xf0]  ;;  %v1635_v37 = vor.u32 %v2144_v45, %v1632_v61  ;;  %v1923_v61 = vor.u32 %v2216_v27, %v1920_v5  ;;  %v1912_v42 = vld [vmem:[#allocation8 + $0x258] sm:$0xf0] }
 0x170   :  { %v2232_v41 = vld [vmem:[#allocation8 + $0x2e4] sm:$0xf]  ;;  %v1984_v39 = vld [vmem:[#allocation8 + $0x2e8] sm:$0xf0]  ;;  %v2242_v11 = vld [vmem:[#allocation8 + $0x334] sm:$0xf] }
 0x171   :  { %v2112_v45 = vld [vmem:[#allocation8 + $0x3e8] sm:$0xf0]  ;;  %v2024_v12 = vld [vmem:[#allocation8 + $0x338] sm:$0xf0]  ;;  %v2240_v28 = vld [vmem:[#allocation8 + $0x324] sm:$0xf] }
 0x172   :  { %1404 = vmatpush.bf16.msra.mxu0 %v1667_v13  ;;  %1417 = vmatpush.bf16.msra.mxu1 %v1731_v44  ;;  %v1763_v13 = vor.u32 %v2176_v49, %v1760_v30  ;;  %v1827_v44 = vor.u32 %v2192_v50, %v1824_v53  ;;  %v2230_v50 = vld [vmem:[#allocation8 + $0x2d4] sm:$0xf]  ;;  %v1976_v53 = vld [vmem:[#allocation8 + $0x2d8] sm:$0xf0]  ;;  %v2016_v29 = vld [vmem:[#allocation8 + $0x328] sm:$0xf0] }
 0x173   :  { %1430 = vmatpush.bf16.msra.mxu2 %v1795_v46  ;;  %1443 = vmatpush.bf16.msra.mxu3 %v1859_v60  ;;  %v2174_v46 = vld [vmem:[#allocation8 + $0x114] sm:$0xf]  ;;  %v1752_v60 = vld [vmem:[#allocation8 + $0x118] sm:$0xf0] }
 0x174   :  { %v2206_v27 = vld [vmem:[#allocation8 + $0x214] sm:$0xf]  ;;  %v1880_v5 = vld [vmem:[#allocation8 + $0x218] sm:$0xf0] }
 0x176   :  { %1405 = vmatpush.bf16.msra.mxu0 %v1659_v8  ;;  %1418 = vmatpush.bf16.msra.mxu1 %v1723_v9  ;;  %v1680_v8 = vld [vmem:[#allocation8 + $0x88] sm:$0xf0]  ;;  %v1755_v9 = vor.u32 %v2174_v46, %v1752_v60  ;;  %v2107_v60 = vor.u32 %v2262_v52, %v2104_v54  ;;  %v2252_v52 = vld [vmem:[#allocation8 + $0x384] sm:$0xf] }
 0x177   :  { %1431 = vmatpush.bf16.msra.mxu2 %v1787_v15  ;;  %1444 = vmatpush.bf16.msra.mxu3 %v1851_v55  ;;  %v2188_v15 = vld [vmem:[#allocation8 + $0x184] sm:$0xf]  ;;  %v1808_v55 = vld [vmem:[#allocation8 + $0x188] sm:$0xf0]  ;;  %v1683_v24 = vor.u32 %v2156_v6, %v1680_v8 }
 0x178   :  { %v1811_v31 = vor.u32 %v2188_v15, %v1808_v55  ;;  %v2258_v15 = vld [vmem:[#allocation8 + $0x3b4] sm:$0xf]  ;;  %v2088_v55 = vld [vmem:[#allocation8 + $0x3b8] sm:$0xf0]  ;;  %v2064_v54 = vld [vmem:[#allocation8 + $0x388] sm:$0xf0] }
 0x17a   :  { %1406 = vmatpush.bf16.msra.mxu0 %v1651_v20  ;;  %1419 = vmatpush.bf16.msra.mxu1 %v1715_v21  ;;  %v2250_v20 = vld [vmem:[#allocation8 + $0x374] sm:$0xf]  ;;  %v1619_v21 = vor.u32 %v2140_v1, %v1616_v4  ;;  %v2260_v1 = vld [vmem:[#allocation8 + $0x3c4] sm:$0xf]  ;;  %v1896_v4 = vld [vmem:[#allocation8 + $0x238] sm:$0xf0] }
 0x17b   :  { %1432 = vmatpush.bf16.msra.mxu2 %v1779_v25  ;;  %1445 = vmatpush.bf16.msra.mxu3 %v1843_v26  ;;  %v2056_v25 = vld [vmem:[#allocation8 + $0x378] sm:$0xf0]  ;;  %v1995_v26 = vor.u32 %v2234_v19, %v1992_v35  ;;  %v2208_v19 = vld [vmem:[#allocation8 + $0x224] sm:$0xf]  ;;  %v1888_v35 = vld [vmem:[#allocation8 + $0x228] sm:$0xf0] }
 0x17c   :  { %1359 = vmatmul.bf16.vlgmr.msrb.gmra.mxu0 %v2770_v59  ;;  %1372 = vmatmul.bf16.vlgmr.msrb.gmra.mxu1 %v2772_v40  ;;  %v2059_v34 = vor.u32 %v2250_v20, %v2056_v25  ;;  %v2027_v20 = vor.u32 %v2242_v11, %v2024_v12  ;;  %v1952_v25 = vld [vmem:[#allocation8 + $0x2a8] sm:$0xf0] }
 0x17d   :  { %1385 = vmatmul.bf16.vlgmr.msrb.gmra.mxu2 %v2774_v14  ;;  %1398 = vmatmul.bf16.vlgmr.msrb.gmra.mxu3 %v2776_v47 }
 0x17e   :  { %1407 = vmatpush.bf16.msra.mxu0 %v1643_v0  ;;  %1420 = vmatpush.bf16.msra.mxu1 %v1707_v36  ;;  %v2248_v0 = vld [vmem:[#allocation8 + $0x364] sm:$0xf]  ;;  %v2048_v36 = vld [vmem:[#allocation8 + $0x368] sm:$0xf0] }
 0x17f   :  { %1433 = vmatpush.bf16.msra.mxu2 %v1771_v43  ;;  %1446 = vmatpush.bf16.msra.mxu3 %v1835_v22  ;;  %v2264_v43 = vld [vmem:[#allocation8 + $0x3e4] sm:$0xf]  ;;  %v1987_v22 = vor.u32 %v2232_v41, %v1984_v39  ;;  %v2051_v49 = vor.u32 %v2248_v0, %v2048_v36  ;;  %v2222_v41 = vld [vmem:[#allocation8 + $0x294] sm:$0xf]  ;;  %v1944_v39 = vld [vmem:[#allocation8 + $0x298] sm:$0xf0] }
 0x180   :  { %v2115_v30 = vor.u32 %v2264_v43, %v2112_v45  ;;  %v2238_v0 = vld [vmem:[#allocation8 + $0x314] sm:$0xf]  ;;  %v2008_v36 = vld [vmem:[#allocation8 + $0x318] sm:$0xf0] }
 0x181   :  { %v2254_v43 = vld [vmem:[#allocation8 + $0x394] sm:$0xf]  ;;  %v2072_v45 = vld [vmem:[#allocation8 + $0x398] sm:$0xf0] }
 0x182   :  { %1408 = vmatpush.bf16.msra.mxu0 %v1635_v37  ;;  %1421 = vmatpush.bf16.msra.mxu1 %v1699_v51  ;;  %v2246_v37 = vld [vmem:[#allocation8 + $0x354] sm:$0xf]  ;;  %v2040_v51 = vld [vmem:[#allocation8 + $0x358] sm:$0xf0] }
 0x183   :  { %1434 = vmatpush.bf16.msra.mxu2 %v1763_v13  ;;  %1447 = vmatpush.bf16.msra.mxu3 %v1827_v44  ;;  %v1915_v13 = vor.u32 %v2214_v7, %v1912_v42  ;;  %v1979_v44 = vor.u32 %v2230_v50, %v1976_v53  ;;  %v2043_v46 = vor.u32 %v2246_v37, %v2040_v51  ;;  %v2204_v7 = vld [vmem:[#allocation8 + $0x204] sm:$0xf]  ;;  %v1872_v42 = vld [vmem:[#allocation8 + $0x208] sm:$0xf0] }
 0x184   :  { %v2220_v50 = vld [vmem:[#allocation8 + $0x284] sm:$0xf]  ;;  %v1936_v53 = vld [vmem:[#allocation8 + $0x288] sm:$0xf0] }
 0x185   :  { %v2236_v37 = vld [vmem:[#allocation8 + $0x304] sm:$0xf]  ;;  %v2000_v51 = vld [vmem:[#allocation8 + $0x308] sm:$0xf0] }
 0x186   :  { %1409 = vmatpush.bf16.msra.mxu0 %v1627_v56  ;;  %1422 = vmatpush.bf16.msra.mxu1 %v1691_v2  ;;  %v2096_v56 = vld [vmem:[#allocation8 + $0x3c8] sm:$0xf0]  ;;  %v2210_v2 = vld [vmem:[#allocation8 + $0x234] sm:$0xf] }
 0x187   :  { %1435 = vmatpush.bf16.msra.mxu2 %v1755_v9  ;;  %1448 = vmatpush.bf16.msra.mxu3 %v1819_v16  ;;  %v2099_v8 = vor.u32 %v2260_v1, %v2096_v56  ;;  %v2226_v9 = vld [vmem:[#allocation8 + $0x2b4] sm:$0xf]  ;;  %v1960_v16 = vld [vmem:[#allocation8 + $0x2b8] sm:$0xf0]  ;;  %v1899_v17 = vor.u32 %v2210_v2, %v1896_v4 }
 0x188   :  { %v1963_v18 = vor.u32 %v2226_v9, %v1960_v16 }
 0x18a   :  { %1410 = vmatpush.bf16.msra.mxu0 %v1619_v21  ;;  %1423 = vmatpush.bf16.msra.mxu1 %v1683_v24  ;;  %v2091_v21 = vor.u32 %v2258_v15, %v2088_v55  ;;  %v2224_v24 = vld [vmem:[#allocation8 + $0x2a4] sm:$0xf]  ;;  %v653_v15 = vld [vmem:[%s2801_s4] sm:$0x3]  ;;  %s2451_s4 = smov [#allocation10]  }
 0x18b   :  { %1436 = vmatpush.bf16.msra.mxu2 %v1747_v10  ;;  %1449 = vmatpush.bf16.msra.mxu3 %v1811_v31  ;;  %v2256_v10 = vld [vmem:[#allocation8 + $0x3a4] sm:$0xf]  ;;  %v2080_v31 = vld [vmem:[#allocation8 + $0x3a8] sm:$0xf0]  ;;  %v655_v55 = vperm.slane %v653_v15, 0  ;;  %s1518_s15 = sshll.u32 %s2451_s4, 4  ;;  %s1519_s15 = int_to_ptr.vmem [resolvable:$true] %s1518_s15 }
 0x18d   :  { %1411 = vmatmul.bf16.vlgmr.msra.gmra.mxu0 %v2750_v38  ;;  %1424 = vmatmul.bf16.vlgmr.msra.gmra.mxu1 %v2752_v32  ;;  %v2228_v38 = vld [vmem:[#allocation8 + $0x2c4] sm:$0xf] }
 0x18e   :  { %1455 = vmatpush.bf16.msrb.mxu0 %v1931_v33  ;;  %1468 = vmatpush.bf16.msrb.mxu1 %v1995_v26  ;;  %v2244_v32 = vld [vmem:[#allocation8 + $0x344] sm:$0xf]  ;;  %v1891_v33 = vor.u32 %v2208_v19, %v1888_v35  ;;  %v1955_v26 = vor.u32 %v2224_v24, %v1952_v25 }
 0x18f   :  { %1481 = vmatpush.bf16.msrb.mxu2 %v2059_v34  ;;  %1494 = vmatpush.bf16.msrb.mxu3 %v2123_v23  ;;  %v2035_v6 = vor.u32 %v2244_v32, %v2032_v63  ;;  %v2019_v34 = vor.u32 %v2240_v28, %v2016_v29  ;;  %v2083_v23 = vor.u32 %v2256_v10, %v2080_v31 }
 0x190   :  { %1437 = vmatmul.bf16.vlgmr.msra.gmra.mxu2 %v2754_v48  ;;  %1450 = vmatmul.bf16.vlgmr.msra.gmra.mxu3 %v2756_v3  ;;  %v1907_v48 = vor.u32 %v2212_v57, %v1904_v58  ;;  %v1971_v3 = vor.u32 %v2228_v38, %v1968_v62  ;;  %v2003_v57 = vor.u32 %v2236_v37, %v2000_v51 }
 0x191   :  { %v2067_v58 = vor.u32 %v2252_v52, %v2064_v54 }
 0x192   :  { %1456 = vmatpush.bf16.msrb.mxu0 %v1923_v61  ;;  %1469 = vmatpush.bf16.msrb.mxu1 %v1987_v22  ;;  %v1883_v61 = vor.u32 %v2206_v27, %v1880_v5  ;;  %v1947_v22 = vor.u32 %v2222_v41, %v1944_v39 }
 0x193   :  { %1482 = vmatpush.bf16.msrb.mxu2 %v2051_v49  ;;  %1495 = vmatpush.bf16.msrb.mxu3 %v2115_v30  ;;  %v2011_v49 = vor.u32 %v2238_v0, %v2008_v36  ;;  %v2075_v30 = vor.u32 %v2254_v43, %v2072_v45 }
 0x196   :  { %1457 = vmatpush.bf16.msrb.mxu0 %v1915_v13  ;;  %1470 = vmatpush.bf16.msrb.mxu1 %v1979_v44  ;;  %v1875_v13 = vor.u32 %v2204_v7, %v1872_v42  ;;  %v1939_v44 = vor.u32 %v2220_v50, %v1936_v53 }
 0x197   :  { %1483 = vmatpush.bf16.msrb.mxu2 %v2043_v46  ;;  %1496 = vmatpush.bf16.msrb.mxu3 %v2107_v60 }
 0x19a   :  { %1458 = vmatpush.bf16.msrb.mxu0 %v1907_v48  ;;  %1471 = vmatpush.bf16.msrb.mxu1 %v1971_v3 }
 0x19b   :  { %1484 = vmatpush.bf16.msrb.mxu2 %v2035_v6  ;;  %1497 = vmatpush.bf16.msrb.mxu3 %v2099_v8 }
 0x19e   :  { %1459 = vmatpush.bf16.msrb.mxu0 %v1899_v17  ;;  %1472 = vmatpush.bf16.msrb.mxu1 %v1963_v18  ;;  %v656_v17 = vperm.slane %v653_v15, 1 }
 0x19f   :  { %1485 = vmatpush.bf16.msrb.mxu2 %v2027_v20  ;;  %1498 = vmatpush.bf16.msrb.mxu3 %v2091_v21 }
 0x1a2   :  { %1460 = vmatpush.bf16.msrb.mxu0 %v1891_v33  ;;  %1473 = vmatpush.bf16.msrb.mxu1 %v1955_v26 }
 0x1a3   :  { %1486 = vmatpush.bf16.msrb.mxu2 %v2019_v34  ;;  %1499 = vmatpush.bf16.msrb.mxu3 %v2083_v23 }
 0x1a6   :  { %1461 = vmatpush.bf16.msrb.mxu0 %v1883_v61  ;;  %1474 = vmatpush.bf16.msrb.mxu1 %v1947_v22 }
 0x1a7   :  { %1487 = vmatpush.bf16.msrb.mxu2 %v2011_v49  ;;  %1500 = vmatpush.bf16.msrb.mxu3 %v2075_v30 }
 0x1aa   :  { %1462 = vmatpush.bf16.msrb.mxu0 %v1875_v13  ;;  %1475 = vmatpush.bf16.msrb.mxu1 %v1939_v44 }
 0x1ab   :  { %1488 = vmatpush.bf16.msrb.mxu2 %v2003_v57  ;;  %1501 = vmatpush.bf16.msrb.mxu3 %v2067_v58 }
 0x1ad   :  { %1463 = vmatmul.bf16.vlgmr.msrb.gmra.mxu0 %v2770_v59  ;;  %1476 = vmatmul.bf16.vlgmr.msrb.gmra.mxu1 %v2772_v40 }
 0x1ae   :  { %1489 = vmatmul.bf16.vlgmr.msrb.gmra.mxu2 %v2774_v14  ;;  %1502 = vmatmul.bf16.vlgmr.msrb.gmra.mxu3 %v2776_v47 }
 0x1e9   :  { %v1308_v46 = vpop.f32.mrf.mxu0  ;;  %v1321_v60 = vpop.f32.mrf.mxu1 }
 0x1ea   :  { %v1309_v35 = vadd.f32 %v1308_v46, %v655_v55 }
 0x1ec   :  { %v1322_v21 = vadd.f32 %v1321_v60, %v1309_v35 }
 0x1f0   :  { %v1334_v38 = vpop.f32.mrf.mxu2  ;;  %v1347_v62 = vpop.f32.mrf.mxu3 }
 0x1f1   :  { %v1310_v32 = vpop.f32.mrf.mxu0  ;;  %v1323_v63 = vpop.f32.mrf.mxu1  ;;  %v1335_v25 = vadd.f32 %v1334_v38, %v1322_v21 }
 0x1f3   :  { %v1348_v29 = vadd.f32 %v1347_v62, %v1335_v25 }
 0x1f8   :  { %v1336_v1 = vpop.f32.mrf.mxu2  ;;  %v1349_v56 = vpop.f32.mrf.mxu3 }
 0x1f9   :  { %v1360_v48 = vpop.f32.mrf.mxu0  ;;  %v1373_v3 = vpop.f32.mrf.mxu1 }
 0x1fa   :  { %v1361_v26 = vadd.f32 %v1360_v48, %v1348_v29 }
 0x1fc   :  { %v1374_v5 = vadd.f32 %v1373_v3, %v1361_v26 }
 0x200   :  { %v1386_v2 = vpop.f32.mrf.mxu2  ;;  %v1399_v4 = vpop.f32.mrf.mxu3 }
 0x201   :  { %v1362_v6 = vpop.f32.mrf.mxu0  ;;  %v1375_v59 = vpop.f32.mrf.mxu1  ;;  %v1387_v39 = vadd.f32 %v1386_v2, %v1374_v5 }
 0x203   :  { %v1400_v61 = vadd.f32 %v1399_v4, %v1387_v39 }
 0x208   :  { %v1388_v8 = vpop.f32.mrf.mxu2  ;;  %v1401_v40 = vpop.f32.mrf.mxu3 }
 0x20a   :  { %v1412_v9 = vpop.f32.mrf.mxu0  ;;  %v1425_v14 = vpop.f32.mrf.mxu1 }
 0x20b   :  { %v1413_v20 = vadd.f32 %v1412_v9, %v656_v17 }
 0x20d   :  { %v1426_v24 = vadd.f32 %v1425_v14, %v1413_v20 }
 0x212   :  { %v1414_v11 = vpop.f32.mrf.mxu0  ;;  %v1427_v12 = vpop.f32.mrf.mxu1 }
 0x213   :  { %v1438_v16 = vpop.f32.mrf.mxu2  ;;  %v1451_v47 = vpop.f32.mrf.mxu3 }
 0x214   :  { %v1439_v28 = vadd.f32 %v1438_v16, %v1426_v24 }
 0x216   :  { %v1452_v10 = vadd.f32 %v1451_v47, %v1439_v28 }
 0x21b   :  { %v1440_v18 = vpop.f32.mrf.mxu2  ;;  %v1453_v19 = vpop.f32.mrf.mxu3 }
 0x22a   :  { %v1464_v31 = vpop.f32.mrf.mxu0  ;;  %v1477_v33 = vpop.f32.mrf.mxu1 }
 0x22b   :  { %v1465_v27 = vadd.f32 %v1464_v31, %v1452_v10 }
 0x22d   :  { %v1478_v34 = vadd.f32 %v1477_v33, %v1465_v27 }
 0x231   :  { %v1490_v23 = vpop.f32.mrf.mxu2  ;;  %v1503_v41 = vpop.f32.mrf.mxu3 }
 0x232   :  { %v1491_v0 = vadd.f32 %v1490_v23, %v1478_v34  ;;  %v1466_v36 = vpop.f32.mrf.mxu0  ;;  %v1479_v43 = vpop.f32.mrf.mxu1 }
 0x234   :  { %v1504_v45 = vadd.f32 %v1503_v41, %v1491_v0 }
 0x236   :  { %v1509_v22 = vrot.slane %v1504_v45, 6 }
 0x238   :  { %v1510_v7 = vsel %vm472_vm7, %v1400_v61, %v1509_v22 }
 0x239   :  { %v1492_v42 = vpop.f32.mrf.mxu2  ;;  %v1505_v49 = vpop.f32.mrf.mxu3  ;;  %1512 = vst [vmem:[#allocation10] sm:$0xf] %v1510_v7 }
 0x23a   :  { %1523 = dma.vmem_to_hbm [thread:$0]  %s1519_s15, 64, %s1521_s18, [#allocation4]  }
 0x23b   :  { %2440 = dma.done.wait [#allocation4], 64  }
 0x23c   :  { %2441 = vsyncadd [#allocation4], 4294967232 }
 0x23d   :  { %1528 = vsyncpa [#allocation3], 1 }
 0x23e   :  { %1529 = vsyncpa [#allocation6], 1 }
 0x23f   :  { %1530 = vsyncpa [#allocation9], 1 }
 0x240   :  { %1531 = vsyncpa [#allocation4], 1 }

</bundles_post_ra>
